<compile_context>
chip_gen: v6e
topology: v6e:2x2x1
jax: 0.10.0
libtpu: 0.0.40
codegen_flags: <defaults>
</compile_context>

<pallas_src>
import math

import jax
import jax.numpy as jnp
from jax.experimental import pallas as pl
from jax.experimental.pallas import tpu as pltpu


# ----------------------------------------------------------------------------
# Kernel
# ----------------------------------------------------------------------------
def _res_block_kernel(H, W):
    """out = (conv2(relu(conv1(x))) + x) applied L times, on a (C, lanes) tile.

    lanes = Bn * H * W (several whole images side by side along the lane axis).
    """

    def kernel(x_ref, w1_ref, b1_ref, w2_ref, b2_ref, m_ref, o_ref):
        C = x_ref.shape[0]
        lanes = x_ref.shape[1]
        L = w1_ref.shape[0]

        masks = m_ref[...]            # (8, 1, lanes), compute dtype, loaded once

        def conv3x3(src, w_mat, bias):
            # src:   (C, lanes)  compute dtype (f32 or bf16) -- no f32 copy made
            # w_mat: (C, 9C)     compute dtype
            # bias:  (C, 1)      f32
            taps = []
            mi = 0
            for tap in range(9):
                dh = tap // 3 - 1
                dw = tap % 3 - 1
                d = dh * W + dw                       # tap offset in flat (h, w)
                if d == 0:
                    taps.append(src)                  # center tap: always valid
                else:
                    # shifted[:, p] = src[:, p + d]; every wrapped / cross-image /
                    # out-of-image read is exactly a masked border position.
                    s = pltpu.roll(src, shift=(-d) % lanes, axis=1)
                    taps.append(s * masks[mi])
                    mi += 1
            stack = jnp.concatenate(taps, axis=0)     # (9C, lanes), compute dtype
            acc = jnp.dot(w_mat, stack, preferred_element_type=jnp.float32)
            return acc + bias                         # (C, lanes) f32

        x = x_ref[...]                                # storage/compute dtype
        cdt = x.dtype
        for l in range(L):                            # static unroll over layers
            t = jnp.maximum(conv3x3(x, w1_ref[l], b1_ref[l]), 0.0).astype(cdt)
            y = conv3x3(t, w2_ref[l], b2_ref[l]) + x.astype(jnp.float32)
            x = y.astype(cdt)
        o_ref[...] = x.astype(o_ref.dtype)

    return kernel


# ----------------------------------------------------------------------------
# Host-side helpers
# ----------------------------------------------------------------------------
def _build_tap_masks(H, W):
    """(8, 1, H*W) {0,1} masks for the 8 non-center taps (zero padding)."""
    hh = jnp.repeat(jnp.arange(H), W).reshape(1, H * W)
    ww = jnp.tile(jnp.arange(W), H).reshape(1, H * W)
    ms = []
    for tap in range(9):
        if tap == 4:                                  # center tap needs no mask
            continue
        dh = tap // 3 - 1
        dw = tap % 3 - 1
        valid = ((hh + dh >= 0) & (hh + dh < H) &
                 (ww + dw >= 0) & (ww + dw < W))
        ms.append(valid)
    return jnp.stack(ms, axis=0).astype(jnp.float32)  # (8, 1, HW)


def _hwio_to_matrix(w_hwio):
    """(3, 3, Cin, Cout) HWIO -> (Cout, 9*Cin) with K ordered (tap, cin)."""
    kh, kw, cin, cout = w_hwio.shape
    return jnp.transpose(w_hwio, (3, 0, 1, 2)).reshape(cout, kh * kw * cin)


def _choose_batch_block(N, C, HW, itemsize, budget_bytes=28 * 1024 * 1024):
    """Pick Bn (images per grid step) and padded batch size.

    Largest Bn whose in-kernel footprint fits the budget; if the whole batch
    fits, use a single grid step (lane dim == full array -> no 128 constraint),
    otherwise Bn*HW must be a multiple of 128 (unmasked lane-dense stores).
    """
    # per-image live bytes: x + t + 9C tap stack (+shift temps) in compute dtype,
    # f32 conv accumulator, 8 masks, ~4C for pipelined in/out buffers.
    per_image = HW * (itemsize * (2 * C + 9 * C + 8 + 4 * C) + 4 * C)
    max_bn = max(1, budget_bytes // max(per_image, 1))
    if max_bn >= N:
        return N, N                                    # one block covers everything
    step = 128 // math.gcd(HW, 128)                    # smallest Bn: Bn*HW % 128 == 0
    bn = max(step, (max_bn // step) * step)
    # TODO(synk): if even Bn == step overflows VMEM, switch to row-band halo tiling.
    npad = ((N + bn - 1) // bn) * bn
    return bn, npad


# ----------------------------------------------------------------------------
# Forward
# ----------------------------------------------------------------------------
def res_block_forward(x_nchw, layer_params, *, use_bf16=False):
    """Res_block.forward: L fused make_res blocks.  Input/Output are NCHW."""
    N, C, H, W = x_nchw.shape
    HW = H * W
    L = len(layer_params)
    cdt = jnp.bfloat16 if use_bf16 else jnp.float32

    # Stacked per-layer weights (L, C, 9C) / f32 biases (L, C, 1).
    w1 = jnp.stack([_hwio_to_matrix(p[0]) for p in layer_params]).astype(cdt)
    b1 = jnp.stack([p[1].reshape(C, 1) for p in layer_params]).astype(jnp.float32)
    w2 = jnp.stack([_hwio_to_matrix(p[2]) for p in layer_params]).astype(cdt)
    b2 = jnp.stack([p[3].reshape(C, 1) for p in layer_params]).astype(jnp.float32)

    Bn, Npad = _choose_batch_block(N, C, HW, jnp.dtype(cdt).itemsize)
    n_groups = Npad // Bn
    lanes = Bn * HW

    masks = jnp.tile(_build_tap_masks(H, W), (1, 1, Bn)).astype(cdt)  # (8,1,lanes)

    # (N, C, H, W) -> (C, Npad*HW); lanes are image-major so each grid block is
    # Bn whole images and rolls/masks see exactly one image geometry per HW span.
    xc = jnp.transpose(x_nchw.astype(cdt), (1, 0, 2, 3)).reshape(C, N * HW)
    if Npad > N:
        xc = jnp.pad(xc, ((0, 0), (0, (Npad - N) * HW)))

    out = pl.pallas_call(
        _res_block_kernel(H, W),
        out_shape=jax.ShapeDtypeStruct((C, Npad * HW), cdt),
        grid=(n_groups,),
        in_specs=[
            pl.BlockSpec((C, lanes), lambda g: (0, g)),         # activations
            pl.BlockSpec((L, C, 9 * C), lambda g: (0, 0, 0)),   # conv1 weights
            pl.BlockSpec((L, C, 1), lambda g: (0, 0, 0)),       # conv1 bias (f32)
            pl.BlockSpec((L, C, 9 * C), lambda g: (0, 0, 0)),   # conv2 weights
            pl.BlockSpec((L, C, 1), lambda g: (0, 0, 0)),       # conv2 bias (f32)
            pl.BlockSpec((8, 1, lanes), lambda g: (0, 0, 0)),   # border masks
        ],
        out_specs=pl.BlockSpec((C, lanes), lambda g: (0, g)),
        compiler_params=pltpu.CompilerParams(
            dimension_semantics=("parallel",),      # batch groups -> both TCs on v7x
            vmem_limit_bytes=48 * 1024 * 1024,      # raise toward ~96MB on v5e/v6e for big tiles
        ),
    )(xc, w1, b1, w2, b2, masks)

    out = out.reshape(C, Npad, H, W)[:, :N]
    return jnp.transpose(out, (1, 0, 2, 3)).astype(x_nchw.dtype)


# ----------------------------------------------------------------------------
# Params + pure-JAX reference
# ----------------------------------------------------------------------------
def init_params(key, nFeat, nDenselayer):
    """Deterministic Conv2d-style init (uniform(-1/sqrt(fan_in), +1/sqrt(fan_in)))."""
    fan_in = nFeat * 3 * 3
    bound = 1.0 / (fan_in ** 0.5)
    params = []
    for i in range(nDenselayer):
        keys = jax.random.split(jax.random.fold_in(key, i), 4)
        w1 = jax.random.uniform(keys[0], (3, 3, nFeat, nFeat), jnp.float32, -bound, bound)
        b1 = jax.random.uniform(keys[1], (nFeat,), jnp.float32, -bound, bound)
        w2 = jax.random.uniform(keys[2], (3, 3, nFeat, nFeat), jnp.float32, -bound, bound)
        b2 = jax.random.uniform(keys[3], (nFeat,), jnp.float32, -bound, bound)
        params.append((w1, b1, w2, b2))
    return params


def ref_res_block(x_nchw, layer_params):
    """Pure-JAX reference (lax.conv) for the correctness check."""
    def conv(z, w, b):
        y = jax.lax.conv_general_dilated(
            z, w, (1, 1), "SAME",
            dimension_numbers=("NHWC", "HWIO", "NHWC"))
        return y + b

    x = jnp.transpose(x_nchw, (0, 2, 3, 1))
    for (w1, b1, w2, b2) in layer_params:
        t = jnp.maximum(conv(x, w1, b1), 0.0)
        x = conv(t, w2, b2) + x
    return jnp.transpose(x, (0, 3, 1, 2))


if __name__ == "__main__":
    nFeat, nDenselayer = 4, 2
    N, H, W = 2, 16, 16

    key = jax.random.PRNGKey(0)
    kx, kp = jax.random.split(key)
    x = jax.random.normal(kx, (N, nFeat, H, W), jnp.float32)   # NCHW like PyTorch
    params = init_params(kp, nFeat, nDenselayer)

    ref = ref_res_block(x, params)

    # f32 path: matches the lax.conv reference.
    out = jax.block_until_ready(res_block_forward(x, params))
    assert out.shape == (N, nFeat, H, W)
    assert jnp.allclose(out, ref, atol=1e-4, rtol=1e-4)

    # bf16 activations/weights (f32 accumulation): halves HBM/XLU/vld bytes and
    # uses the native MXU dtype on v6e/v7x.  Looser tolerance (reduced mantissa).
    out_bf16 = jax.block_until_ready(res_block_forward(x, params, use_bf16=True))
    assert jnp.allclose(out_bf16.astype(jnp.float32), ref, atol=1.5e-1, rtol=1.5e-1)

    print("KERNEL_OK")
</pallas_src>

<mosaic_0001>
module attributes {stable_mosaic.version = 11 : i64} {
  func.func @kernel(%arg0: i32, %arg1: memref<4x512xf32, #tpu.memory_space<vmem>>, %arg2: memref<2x4x36xf32, #tpu.memory_space<vmem>>, %arg3: memref<2x4x1xf32, #tpu.memory_space<vmem>>, %arg4: memref<2x4x36xf32, #tpu.memory_space<vmem>>, %arg5: memref<2x4x1xf32, #tpu.memory_space<vmem>>, %arg6: memref<8x1x512xf32, #tpu.memory_space<vmem>>, %arg7: memref<4x512xf32, #tpu.memory_space<vmem>>) attributes {dimension_semantics = [#tpu.dimension_semantics<parallel>], iteration_bounds = array<i64: 1>, scalar_prefetch = 0 : i64, scratch_operands = 0 : i64, tpu.core_type = #tpu.core_type<tc>, window_params = [{transform_indices = @transform_0, window_bounds = array<i64: 4, 512>}, {pipeline_mode = #tpu.pipeline_mode<synchronous>, transform_indices = @transform_1, window_bounds = array<i64: 2, 4, 36>}, {pipeline_mode = #tpu.pipeline_mode<synchronous>, transform_indices = @transform_2, window_bounds = array<i64: 2, 4, 1>}, {pipeline_mode = #tpu.pipeline_mode<synchronous>, transform_indices = @transform_3, window_bounds = array<i64: 2, 4, 36>}, {pipeline_mode = #tpu.pipeline_mode<synchronous>, transform_indices = @transform_4, window_bounds = array<i64: 2, 4, 1>}, {pipeline_mode = #tpu.pipeline_mode<synchronous>, transform_indices = @transform_5, window_bounds = array<i64: 8, 1, 512>}, {transform_indices = @transform_6, window_bounds = array<i64: 4, 512>}]} {
    %c0 = arith.constant 0 : index
    %c0_0 = arith.constant 0 : index
    %c0_1 = arith.constant 0 : index
    %0 = vector.load %arg6[%c0, %c0_0, %c0_1] : memref<8x1x512xf32, #tpu.memory_space<vmem>>, vector<8x1x512xf32>
    %c0_2 = arith.constant 0 : index
    %c0_3 = arith.constant 0 : index
    %1 = vector.load %arg1[%c0_2, %c0_3] : memref<4x512xf32, #tpu.memory_space<vmem>>, vector<4x512xf32>
    %c0_4 = arith.constant 0 : index
    %c0_5 = arith.constant 0 : index
    %c0_6 = arith.constant 0 : index
    %2 = vector.load %arg2[%c0_4, %c0_5, %c0_6] : memref<2x4x36xf32, #tpu.memory_space<vmem>>, vector<1x4x36xf32>
    %3 = vector.shape_cast %2 : vector<1x4x36xf32> to vector<4x36xf32>
    %c0_7 = arith.constant 0 : index
    %c0_8 = arith.constant 0 : index
    %c0_9 = arith.constant 0 : index
    %4 = vector.load %arg3[%c0_7, %c0_8, %c0_9] : memref<2x4x1xf32, #tpu.memory_space<vmem>>, vector<1x4x1xf32>
    %5 = vector.shape_cast %4 : vector<1x4x1xf32> to vector<4x1xf32>
    %c17_i32 = arith.constant 17 : i32
    %6 = tpu.dynamic_rotate %1 by %c17_i32 dim 1 : vector<4x512xf32>, i32 -> vector<4x512xf32>
    %7 = vector.extract_strided_slice %0 {offsets = [0, 0, 0], sizes = [1, 1, 512], strides = [1, 1, 1]} : vector<8x1x512xf32> to vector<1x1x512xf32>
    %8 = vector.shape_cast %7 : vector<1x1x512xf32> to vector<1x512xf32>
    %9 = vector.broadcast %8 : vector<1x512xf32> to vector<4x512xf32>
    %10 = arith.mulf %6, %9 : vector<4x512xf32>
    %c16_i32 = arith.constant 16 : i32
    %11 = tpu.dynamic_rotate %1 by %c16_i32 dim 1 : vector<4x512xf32>, i32 -> vector<4x512xf32>
    %12 = vector.extract_strided_slice %0 {offsets = [1, 0, 0], sizes = [1, 1, 512], strides = [1, 1, 1]} : vector<8x1x512xf32> to vector<1x1x512xf32>
    %13 = vector.shape_cast %12 : vector<1x1x512xf32> to vector<1x512xf32>
    %14 = vector.broadcast %13 : vector<1x512xf32> to vector<4x512xf32>
    %15 = arith.mulf %11, %14 : vector<4x512xf32>
    %c15_i32 = arith.constant 15 : i32
    %16 = tpu.dynamic_rotate %1 by %c15_i32 dim 1 : vector<4x512xf32>, i32 -> vector<4x512xf32>
    %17 = vector.extract_strided_slice %0 {offsets = [2, 0, 0], sizes = [1, 1, 512], strides = [1, 1, 1]} : vector<8x1x512xf32> to vector<1x1x512xf32>
    %18 = vector.shape_cast %17 : vector<1x1x512xf32> to vector<1x512xf32>
    %19 = vector.broadcast %18 : vector<1x512xf32> to vector<4x512xf32>
    %20 = arith.mulf %16, %19 : vector<4x512xf32>
    %c1_i32 = arith.constant 1 : i32
    %21 = tpu.dynamic_rotate %1 by %c1_i32 dim 1 : vector<4x512xf32>, i32 -> vector<4x512xf32>
    %22 = vector.extract_strided_slice %0 {offsets = [3, 0, 0], sizes = [1, 1, 512], strides = [1, 1, 1]} : vector<8x1x512xf32> to vector<1x1x512xf32>
    %23 = vector.shape_cast %22 : vector<1x1x512xf32> to vector<1x512xf32>
    %24 = vector.broadcast %23 : vector<1x512xf32> to vector<4x512xf32>
    %25 = arith.mulf %21, %24 : vector<4x512xf32>
    %c511_i32 = arith.constant 511 : i32
    %26 = tpu.dynamic_rotate %1 by %c511_i32 dim 1 : vector<4x512xf32>, i32 -> vector<4x512xf32>
    %27 = vector.extract_strided_slice %0 {offsets = [4, 0, 0], sizes = [1, 1, 512], strides = [1, 1, 1]} : vector<8x1x512xf32> to vector<1x1x512xf32>
    %28 = vector.shape_cast %27 : vector<1x1x512xf32> to vector<1x512xf32>
    %29 = vector.broadcast %28 : vector<1x512xf32> to vector<4x512xf32>
    %30 = arith.mulf %26, %29 : vector<4x512xf32>
    %c497_i32 = arith.constant 497 : i32
    %31 = tpu.dynamic_rotate %1 by %c497_i32 dim 1 : vector<4x512xf32>, i32 -> vector<4x512xf32>
    %32 = vector.extract_strided_slice %0 {offsets = [5, 0, 0], sizes = [1, 1, 512], strides = [1, 1, 1]} : vector<8x1x512xf32> to vector<1x1x512xf32>
    %33 = vector.shape_cast %32 : vector<1x1x512xf32> to vector<1x512xf32>
    %34 = vector.broadcast %33 : vector<1x512xf32> to vector<4x512xf32>
    %35 = arith.mulf %31, %34 : vector<4x512xf32>
    %c496_i32 = arith.constant 496 : i32
    %36 = tpu.dynamic_rotate %1 by %c496_i32 dim 1 : vector<4x512xf32>, i32 -> vector<4x512xf32>
    %37 = vector.extract_strided_slice %0 {offsets = [6, 0, 0], sizes = [1, 1, 512], strides = [1, 1, 1]} : vector<8x1x512xf32> to vector<1x1x512xf32>
    %38 = vector.shape_cast %37 : vector<1x1x512xf32> to vector<1x512xf32>
    %39 = vector.broadcast %38 : vector<1x512xf32> to vector<4x512xf32>
    %40 = arith.mulf %36, %39 : vector<4x512xf32>
    %c495_i32 = arith.constant 495 : i32
    %41 = tpu.dynamic_rotate %1 by %c495_i32 dim 1 : vector<4x512xf32>, i32 -> vector<4x512xf32>
    %42 = vector.extract_strided_slice %0 {offsets = [7, 0, 0], sizes = [1, 1, 512], strides = [1, 1, 1]} : vector<8x1x512xf32> to vector<1x1x512xf32>
    %43 = vector.shape_cast %42 : vector<1x1x512xf32> to vector<1x512xf32>
    %44 = vector.broadcast %43 : vector<1x512xf32> to vector<4x512xf32>
    %45 = arith.mulf %41, %44 : vector<4x512xf32>
    %46 = tpu.concatenate %10, %15, %20, %25, %1, %30, %35, %40, %45 in 0 : vector<4x512xf32>, vector<4x512xf32>, vector<4x512xf32>, vector<4x512xf32>, vector<4x512xf32>, vector<4x512xf32>, vector<4x512xf32>, vector<4x512xf32>, vector<4x512xf32> -> vector<36x512xf32>
    %cst = arith.constant dense<0.000000e+00> : vector<4x512xf32>
    %47 = tpu.matmul %3, %46, %cst {dimension_numbers = #tpu.dot_dimension_numbers<[1], [0], [0], [1], [0, 0, 1, 1], [], []>} : vector<4x36xf32>, vector<36x512xf32>, vector<4x512xf32> -> vector<4x512xf32>
    %48 = vector.broadcast %5 : vector<4x1xf32> to vector<4x512xf32>
    %49 = arith.addf %47, %48 : vector<4x512xf32>
    %cst_10 = arith.constant 0.000000e+00 : f32
    %50 = vector.broadcast %cst_10 : f32 to vector<4x512xf32>
    %51 = arith.maximumf %49, %50 : vector<4x512xf32>
    %c0_11 = arith.constant 0 : index
    %c0_12 = arith.constant 0 : index
    %c0_13 = arith.constant 0 : index
    %52 = vector.load %arg4[%c0_11, %c0_12, %c0_13] : memref<2x4x36xf32, #tpu.memory_space<vmem>>, vector<1x4x36xf32>
    %53 = vector.shape_cast %52 : vector<1x4x36xf32> to vector<4x36xf32>
    %c0_14 = arith.constant 0 : index
    %c0_15 = arith.constant 0 : index
    %c0_16 = arith.constant 0 : index
    %54 = vector.load %arg5[%c0_14, %c0_15, %c0_16] : memref<2x4x1xf32, #tpu.memory_space<vmem>>, vector<1x4x1xf32>
    %55 = vector.shape_cast %54 : vector<1x4x1xf32> to vector<4x1xf32>
    %c17_i32_17 = arith.constant 17 : i32
    %56 = tpu.dynamic_rotate %51 by %c17_i32_17 dim 1 : vector<4x512xf32>, i32 -> vector<4x512xf32>
    %57 = vector.extract_strided_slice %0 {offsets = [0, 0, 0], sizes = [1, 1, 512], strides = [1, 1, 1]} : vector<8x1x512xf32> to vector<1x1x512xf32>
    %58 = vector.shape_cast %57 : vector<1x1x512xf32> to vector<1x512xf32>
    %59 = vector.broadcast %58 : vector<1x512xf32> to vector<4x512xf32>
    %60 = arith.mulf %56, %59 : vector<4x512xf32>
    %c16_i32_18 = arith.constant 16 : i32
    %61 = tpu.dynamic_rotate %51 by %c16_i32_18 dim 1 : vector<4x512xf32>, i32 -> vector<4x512xf32>
    %62 = vector.extract_strided_slice %0 {offsets = [1, 0, 0], sizes = [1, 1, 512], strides = [1, 1, 1]} : vector<8x1x512xf32> to vector<1x1x512xf32>
    %63 = vector.shape_cast %62 : vector<1x1x512xf32> to vector<1x512xf32>
    %64 = vector.broadcast %63 : vector<1x512xf32> to vector<4x512xf32>
    %65 = arith.mulf %61, %64 : vector<4x512xf32>
    %c15_i32_19 = arith.constant 15 : i32
    %66 = tpu.dynamic_rotate %51 by %c15_i32_19 dim 1 : vector<4x512xf32>, i32 -> vector<4x512xf32>
    %67 = vector.extract_strided_slice %0 {offsets = [2, 0, 0], sizes = [1, 1, 512], strides = [1, 1, 1]} : vector<8x1x512xf32> to vector<1x1x512xf32>
    %68 = vector.shape_cast %67 : vector<1x1x512xf32> to vector<1x512xf32>
    %69 = vector.broadcast %68 : vector<1x512xf32> to vector<4x512xf32>
    %70 = arith.mulf %66, %69 : vector<4x512xf32>
    %c1_i32_20 = arith.constant 1 : i32
    %71 = tpu.dynamic_rotate %51 by %c1_i32_20 dim 1 : vector<4x512xf32>, i32 -> vector<4x512xf32>
    %72 = vector.extract_strided_slice %0 {offsets = [3, 0, 0], sizes = [1, 1, 512], strides = [1, 1, 1]} : vector<8x1x512xf32> to vector<1x1x512xf32>
    %73 = vector.shape_cast %72 : vector<1x1x512xf32> to vector<1x512xf32>
    %74 = vector.broadcast %73 : vector<1x512xf32> to vector<4x512xf32>
    %75 = arith.mulf %71, %74 : vector<4x512xf32>
    %c511_i32_21 = arith.constant 511 : i32
    %76 = tpu.dynamic_rotate %51 by %c511_i32_21 dim 1 : vector<4x512xf32>, i32 -> vector<4x512xf32>
    %77 = vector.extract_strided_slice %0 {offsets = [4, 0, 0], sizes = [1, 1, 512], strides = [1, 1, 1]} : vector<8x1x512xf32> to vector<1x1x512xf32>
    %78 = vector.shape_cast %77 : vector<1x1x512xf32> to vector<1x512xf32>
    %79 = vector.broadcast %78 : vector<1x512xf32> to vector<4x512xf32>
    %80 = arith.mulf %76, %79 : vector<4x512xf32>
    %c497_i32_22 = arith.constant 497 : i32
    %81 = tpu.dynamic_rotate %51 by %c497_i32_22 dim 1 : vector<4x512xf32>, i32 -> vector<4x512xf32>
    %82 = vector.extract_strided_slice %0 {offsets = [5, 0, 0], sizes = [1, 1, 512], strides = [1, 1, 1]} : vector<8x1x512xf32> to vector<1x1x512xf32>
    %83 = vector.shape_cast %82 : vector<1x1x512xf32> to vector<1x512xf32>
    %84 = vector.broadcast %83 : vector<1x512xf32> to vector<4x512xf32>
    %85 = arith.mulf %81, %84 : vector<4x512xf32>
    %c496_i32_23 = arith.constant 496 : i32
    %86 = tpu.dynamic_rotate %51 by %c496_i32_23 dim 1 : vector<4x512xf32>, i32 -> vector<4x512xf32>
    %87 = vector.extract_strided_slice %0 {offsets = [6, 0, 0], sizes = [1, 1, 512], strides = [1, 1, 1]} : vector<8x1x512xf32> to vector<1x1x512xf32>
    %88 = vector.shape_cast %87 : vector<1x1x512xf32> to vector<1x512xf32>
    %89 = vector.broadcast %88 : vector<1x512xf32> to vector<4x512xf32>
    %90 = arith.mulf %86, %89 : vector<4x512xf32>
    %c495_i32_24 = arith.constant 495 : i32
    %91 = tpu.dynamic_rotate %51 by %c495_i32_24 dim 1 : vector<4x512xf32>, i32 -> vector<4x512xf32>
    %92 = vector.extract_strided_slice %0 {offsets = [7, 0, 0], sizes = [1, 1, 512], strides = [1, 1, 1]} : vector<8x1x512xf32> to vector<1x1x512xf32>
    %93 = vector.shape_cast %92 : vector<1x1x512xf32> to vector<1x512xf32>
    %94 = vector.broadcast %93 : vector<1x512xf32> to vector<4x512xf32>
    %95 = arith.mulf %91, %94 : vector<4x512xf32>
    %96 = tpu.concatenate %60, %65, %70, %75, %51, %80, %85, %90, %95 in 0 : vector<4x512xf32>, vector<4x512xf32>, vector<4x512xf32>, vector<4x512xf32>, vector<4x512xf32>, vector<4x512xf32>, vector<4x512xf32>, vector<4x512xf32>, vector<4x512xf32> -> vector<36x512xf32>
    %cst_25 = arith.constant dense<0.000000e+00> : vector<4x512xf32>
    %97 = tpu.matmul %53, %96, %cst_25 {dimension_numbers = #tpu.dot_dimension_numbers<[1], [0], [0], [1], [0, 0, 1, 1], [], []>} : vector<4x36xf32>, vector<36x512xf32>, vector<4x512xf32> -> vector<4x512xf32>
    %98 = vector.broadcast %55 : vector<4x1xf32> to vector<4x512xf32>
    %99 = arith.addf %97, %98 : vector<4x512xf32>
    %100 = arith.addf %99, %1 : vector<4x512xf32>
    %c1 = arith.constant 1 : index
    %c0_26 = arith.constant 0 : index
    %c0_27 = arith.constant 0 : index
    %101 = vector.load %arg2[%c1, %c0_26, %c0_27] : memref<2x4x36xf32, #tpu.memory_space<vmem>>, vector<1x4x36xf32>
    %102 = vector.shape_cast %101 : vector<1x4x36xf32> to vector<4x36xf32>
    %c1_28 = arith.constant 1 : index
    %c0_29 = arith.constant 0 : index
    %c0_30 = arith.constant 0 : index
    %103 = vector.load %arg3[%c1_28, %c0_29, %c0_30] : memref<2x4x1xf32, #tpu.memory_space<vmem>>, vector<1x4x1xf32>
    %104 = vector.shape_cast %103 : vector<1x4x1xf32> to vector<4x1xf32>
    %c17_i32_31 = arith.constant 17 : i32
    %105 = tpu.dynamic_rotate %100 by %c17_i32_31 dim 1 : vector<4x512xf32>, i32 -> vector<4x512xf32>
    %106 = vector.extract_strided_slice %0 {offsets = [0, 0, 0], sizes = [1, 1, 512], strides = [1, 1, 1]} : vector<8x1x512xf32> to vector<1x1x512xf32>
    %107 = vector.shape_cast %106 : vector<1x1x512xf32> to vector<1x512xf32>
    %108 = vector.broadcast %107 : vector<1x512xf32> to vector<4x512xf32>
    %109 = arith.mulf %105, %108 : vector<4x512xf32>
    %c16_i32_32 = arith.constant 16 : i32
    %110 = tpu.dynamic_rotate %100 by %c16_i32_32 dim 1 : vector<4x512xf32>, i32 -> vector<4x512xf32>
    %111 = vector.extract_strided_slice %0 {offsets = [1, 0, 0], sizes = [1, 1, 512], strides = [1, 1, 1]} : vector<8x1x512xf32> to vector<1x1x512xf32>
    %112 = vector.shape_cast %111 : vector<1x1x512xf32> to vector<1x512xf32>
    %113 = vector.broadcast %112 : vector<1x512xf32> to vector<4x512xf32>
    %114 = arith.mulf %110, %113 : vector<4x512xf32>
    %c15_i32_33 = arith.constant 15 : i32
    %115 = tpu.dynamic_rotate %100 by %c15_i32_33 dim 1 : vector<4x512xf32>, i32 -> vector<4x512xf32>
    %116 = vector.extract_strided_slice %0 {offsets = [2, 0, 0], sizes = [1, 1, 512], strides = [1, 1, 1]} : vector<8x1x512xf32> to vector<1x1x512xf32>
    %117 = vector.shape_cast %116 : vector<1x1x512xf32> to vector<1x512xf32>
    %118 = vector.broadcast %117 : vector<1x512xf32> to vector<4x512xf32>
    %119 = arith.mulf %115, %118 : vector<4x512xf32>
    %c1_i32_34 = arith.constant 1 : i32
    %120 = tpu.dynamic_rotate %100 by %c1_i32_34 dim 1 : vector<4x512xf32>, i32 -> vector<4x512xf32>
    %121 = vector.extract_strided_slice %0 {offsets = [3, 0, 0], sizes = [1, 1, 512], strides = [1, 1, 1]} : vector<8x1x512xf32> to vector<1x1x512xf32>
    %122 = vector.shape_cast %121 : vector<1x1x512xf32> to vector<1x512xf32>
    %123 = vector.broadcast %122 : vector<1x512xf32> to vector<4x512xf32>
    %124 = arith.mulf %120, %123 : vector<4x512xf32>
    %c511_i32_35 = arith.constant 511 : i32
    %125 = tpu.dynamic_rotate %100 by %c511_i32_35 dim 1 : vector<4x512xf32>, i32 -> vector<4x512xf32>
    %126 = vector.extract_strided_slice %0 {offsets = [4, 0, 0], sizes = [1, 1, 512], strides = [1, 1, 1]} : vector<8x1x512xf32> to vector<1x1x512xf32>
    %127 = vector.shape_cast %126 : vector<1x1x512xf32> to vector<1x512xf32>
    %128 = vector.broadcast %127 : vector<1x512xf32> to vector<4x512xf32>
    %129 = arith.mulf %125, %128 : vector<4x512xf32>
    %c497_i32_36 = arith.constant 497 : i32
    %130 = tpu.dynamic_rotate %100 by %c497_i32_36 dim 1 : vector<4x512xf32>, i32 -> vector<4x512xf32>
    %131 = vector.extract_strided_slice %0 {offsets = [5, 0, 0], sizes = [1, 1, 512], strides = [1, 1, 1]} : vector<8x1x512xf32> to vector<1x1x512xf32>
    %132 = vector.shape_cast %131 : vector<1x1x512xf32> to vector<1x512xf32>
    %133 = vector.broadcast %132 : vector<1x512xf32> to vector<4x512xf32>
    %134 = arith.mulf %130, %133 : vector<4x512xf32>
    %c496_i32_37 = arith.constant 496 : i32
    %135 = tpu.dynamic_rotate %100 by %c496_i32_37 dim 1 : vector<4x512xf32>, i32 -> vector<4x512xf32>
    %136 = vector.extract_strided_slice %0 {offsets = [6, 0, 0], sizes = [1, 1, 512], strides = [1, 1, 1]} : vector<8x1x512xf32> to vector<1x1x512xf32>
    %137 = vector.shape_cast %136 : vector<1x1x512xf32> to vector<1x512xf32>
    %138 = vector.broadcast %137 : vector<1x512xf32> to vector<4x512xf32>
    %139 = arith.mulf %135, %138 : vector<4x512xf32>
    %c495_i32_38 = arith.constant 495 : i32
    %140 = tpu.dynamic_rotate %100 by %c495_i32_38 dim 1 : vector<4x512xf32>, i32 -> vector<4x512xf32>
    %141 = vector.extract_strided_slice %0 {offsets = [7, 0, 0], sizes = [1, 1, 512], strides = [1, 1, 1]} : vector<8x1x512xf32> to vector<1x1x512xf32>
    %142 = vector.shape_cast %141 : vector<1x1x512xf32> to vector<1x512xf32>
    %143 = vector.broadcast %142 : vector<1x512xf32> to vector<4x512xf32>
    %144 = arith.mulf %140, %143 : vector<4x512xf32>
    %145 = tpu.concatenate %109, %114, %119, %124, %100, %129, %134, %139, %144 in 0 : vector<4x512xf32>, vector<4x512xf32>, vector<4x512xf32>, vector<4x512xf32>, vector<4x512xf32>, vector<4x512xf32>, vector<4x512xf32>, vector<4x512xf32>, vector<4x512xf32> -> vector<36x512xf32>
    %cst_39 = arith.constant dense<0.000000e+00> : vector<4x512xf32>
    %146 = tpu.matmul %102, %145, %cst_39 {dimension_numbers = #tpu.dot_dimension_numbers<[1], [0], [0], [1], [0, 0, 1, 1], [], []>} : vector<4x36xf32>, vector<36x512xf32>, vector<4x512xf32> -> vector<4x512xf32>
    %147 = vector.broadcast %104 : vector<4x1xf32> to vector<4x512xf32>
    %148 = arith.addf %146, %147 : vector<4x512xf32>
    %cst_40 = arith.constant 0.000000e+00 : f32
    %149 = vector.broadcast %cst_40 : f32 to vector<4x512xf32>
    %150 = arith.maximumf %148, %149 : vector<4x512xf32>
    %c1_41 = arith.constant 1 : index
    %c0_42 = arith.constant 0 : index
    %c0_43 = arith.constant 0 : index
    %151 = vector.load %arg4[%c1_41, %c0_42, %c0_43] : memref<2x4x36xf32, #tpu.memory_space<vmem>>, vector<1x4x36xf32>
    %152 = vector.shape_cast %151 : vector<1x4x36xf32> to vector<4x36xf32>
    %c1_44 = arith.constant 1 : index
    %c0_45 = arith.constant 0 : index
    %c0_46 = arith.constant 0 : index
    %153 = vector.load %arg5[%c1_44, %c0_45, %c0_46] : memref<2x4x1xf32, #tpu.memory_space<vmem>>, vector<1x4x1xf32>
    %154 = vector.shape_cast %153 : vector<1x4x1xf32> to vector<4x1xf32>
    %c17_i32_47 = arith.constant 17 : i32
    %155 = tpu.dynamic_rotate %150 by %c17_i32_47 dim 1 : vector<4x512xf32>, i32 -> vector<4x512xf32>
    %156 = vector.extract_strided_slice %0 {offsets = [0, 0, 0], sizes = [1, 1, 512], strides = [1, 1, 1]} : vector<8x1x512xf32> to vector<1x1x512xf32>
    %157 = vector.shape_cast %156 : vector<1x1x512xf32> to vector<1x512xf32>
    %158 = vector.broadcast %157 : vector<1x512xf32> to vector<4x512xf32>
    %159 = arith.mulf %155, %158 : vector<4x512xf32>
    %c16_i32_48 = arith.constant 16 : i32
    %160 = tpu.dynamic_rotate %150 by %c16_i32_48 dim 1 : vector<4x512xf32>, i32 -> vector<4x512xf32>
    %161 = vector.extract_strided_slice %0 {offsets = [1, 0, 0], sizes = [1, 1, 512], strides = [1, 1, 1]} : vector<8x1x512xf32> to vector<1x1x512xf32>
    %162 = vector.shape_cast %161 : vector<1x1x512xf32> to vector<1x512xf32>
    %163 = vector.broadcast %162 : vector<1x512xf32> to vector<4x512xf32>
    %164 = arith.mulf %160, %163 : vector<4x512xf32>
    %c15_i32_49 = arith.constant 15 : i32
    %165 = tpu.dynamic_rotate %150 by %c15_i32_49 dim 1 : vector<4x512xf32>, i32 -> vector<4x512xf32>
    %166 = vector.extract_strided_slice %0 {offsets = [2, 0, 0], sizes = [1, 1, 512], strides = [1, 1, 1]} : vector<8x1x512xf32> to vector<1x1x512xf32>
    %167 = vector.shape_cast %166 : vector<1x1x512xf32> to vector<1x512xf32>
    %168 = vector.broadcast %167 : vector<1x512xf32> to vector<4x512xf32>
    %169 = arith.mulf %165, %168 : vector<4x512xf32>
    %c1_i32_50 = arith.constant 1 : i32
    %170 = tpu.dynamic_rotate %150 by %c1_i32_50 dim 1 : vector<4x512xf32>, i32 -> vector<4x512xf32>
    %171 = vector.extract_strided_slice %0 {offsets = [3, 0, 0], sizes = [1, 1, 512], strides = [1, 1, 1]} : vector<8x1x512xf32> to vector<1x1x512xf32>
    %172 = vector.shape_cast %171 : vector<1x1x512xf32> to vector<1x512xf32>
    %173 = vector.broadcast %172 : vector<1x512xf32> to vector<4x512xf32>
    %174 = arith.mulf %170, %173 : vector<4x512xf32>
    %c511_i32_51 = arith.constant 511 : i32
    %175 = tpu.dynamic_rotate %150 by %c511_i32_51 dim 1 : vector<4x512xf32>, i32 -> vector<4x512xf32>
    %176 = vector.extract_strided_slice %0 {offsets = [4, 0, 0], sizes = [1, 1, 512], strides = [1, 1, 1]} : vector<8x1x512xf32> to vector<1x1x512xf32>
    %177 = vector.shape_cast %176 : vector<1x1x512xf32> to vector<1x512xf32>
    %178 = vector.broadcast %177 : vector<1x512xf32> to vector<4x512xf32>
    %179 = arith.mulf %175, %178 : vector<4x512xf32>
    %c497_i32_52 = arith.constant 497 : i32
    %180 = tpu.dynamic_rotate %150 by %c497_i32_52 dim 1 : vector<4x512xf32>, i32 -> vector<4x512xf32>
    %181 = vector.extract_strided_slice %0 {offsets = [5, 0, 0], sizes = [1, 1, 512], strides = [1, 1, 1]} : vector<8x1x512xf32> to vector<1x1x512xf32>
    %182 = vector.shape_cast %181 : vector<1x1x512xf32> to vector<1x512xf32>
    %183 = vector.broadcast %182 : vector<1x512xf32> to vector<4x512xf32>
    %184 = arith.mulf %180, %183 : vector<4x512xf32>
    %c496_i32_53 = arith.constant 496 : i32
    %185 = tpu.dynamic_rotate %150 by %c496_i32_53 dim 1 : vector<4x512xf32>, i32 -> vector<4x512xf32>
    %186 = vector.extract_strided_slice %0 {offsets = [6, 0, 0], sizes = [1, 1, 512], strides = [1, 1, 1]} : vector<8x1x512xf32> to vector<1x1x512xf32>
    %187 = vector.shape_cast %186 : vector<1x1x512xf32> to vector<1x512xf32>
    %188 = vector.broadcast %187 : vector<1x512xf32> to vector<4x512xf32>
    %189 = arith.mulf %185, %188 : vector<4x512xf32>
    %c495_i32_54 = arith.constant 495 : i32
    %190 = tpu.dynamic_rotate %150 by %c495_i32_54 dim 1 : vector<4x512xf32>, i32 -> vector<4x512xf32>
    %191 = vector.extract_strided_slice %0 {offsets = [7, 0, 0], sizes = [1, 1, 512], strides = [1, 1, 1]} : vector<8x1x512xf32> to vector<1x1x512xf32>
    %192 = vector.shape_cast %191 : vector<1x1x512xf32> to vector<1x512xf32>
    %193 = vector.broadcast %192 : vector<1x512xf32> to vector<4x512xf32>
    %194 = arith.mulf %190, %193 : vector<4x512xf32>
    %195 = tpu.concatenate %159, %164, %169, %174, %150, %179, %184, %189, %194 in 0 : vector<4x512xf32>, vector<4x512xf32>, vector<4x512xf32>, vector<4x512xf32>, vector<4x512xf32>, vector<4x512xf32>, vector<4x512xf32>, vector<4x512xf32>, vector<4x512xf32> -> vector<36x512xf32>
    %cst_55 = arith.constant dense<0.000000e+00> : vector<4x512xf32>
    %196 = tpu.matmul %152, %195, %cst_55 {dimension_numbers = #tpu.dot_dimension_numbers<[1], [0], [0], [1], [0, 0, 1, 1], [], []>} : vector<4x36xf32>, vector<36x512xf32>, vector<4x512xf32> -> vector<4x512xf32>
    %197 = vector.broadcast %154 : vector<4x1xf32> to vector<4x512xf32>
    %198 = arith.addf %196, %197 : vector<4x512xf32>
    %199 = arith.addf %198, %100 : vector<4x512xf32>
    %c0_56 = arith.constant 0 : index
    %c0_57 = arith.constant 0 : index
    %200 = vector.load %arg7[%c0_56, %c0_57] : memref<4x512xf32, #tpu.memory_space<vmem>>, vector<4x512xf32>
    tpu.vector_store %arg7[%c0_56, %c0_57], %199 {strides = array<i32>} : memref<4x512xf32, #tpu.memory_space<vmem>>, vector<4x512xf32>,
    return
  }
  func.func @transform_0(%arg0: i32) -> (i32, i32) {
    %c0_i32 = arith.constant 0 : i32
    %c0_i32_0 = arith.constant 0 : i32
    return %c0_i32, %arg0 : i32, i32
  }
  func.func @transform_1(%arg0: i32) -> (i32, i32, i32) {
    %c0_i32 = arith.constant 0 : i32
    %c0_i32_0 = arith.constant 0 : i32
    %c0_i32_1 = arith.constant 0 : i32
    %c0_i32_2 = arith.constant 0 : i32
    return %c0_i32, %c0_i32_0, %c0_i32_1 : i32, i32, i32
  }
  func.func @transform_2(%arg0: i32) -> (i32, i32, i32) {
    %c0_i32 = arith.constant 0 : i32
    %c0_i32_0 = arith.constant 0 : i32
    %c0_i32_1 = arith.constant 0 : i32
    %c0_i32_2 = arith.constant 0 : i32
    return %c0_i32, %c0_i32_0, %c0_i32_1 : i32, i32, i32
  }
  func.func @transform_3(%arg0: i32) -> (i32, i32, i32) {
    %c0_i32 = arith.constant 0 : i32
    %c0_i32_0 = arith.constant 0 : i32
    %c0_i32_1 = arith.constant 0 : i32
    %c0_i32_2 = arith.constant 0 : i32
    return %c0_i32, %c0_i32_0, %c0_i32_1 : i32, i32, i32
  }
  func.func @transform_4(%arg0: i32) -> (i32, i32, i32) {
    %c0_i32 = arith.constant 0 : i32
    %c0_i32_0 = arith.constant 0 : i32
    %c0_i32_1 = arith.constant 0 : i32
    %c0_i32_2 = arith.constant 0 : i32
    return %c0_i32, %c0_i32_0, %c0_i32_1 : i32, i32, i32
  }
  func.func @transform_5(%arg0: i32) -> (i32, i32, i32) {
    %c0_i32 = arith.constant 0 : i32
    %c0_i32_0 = arith.constant 0 : i32
    %c0_i32_1 = arith.constant 0 : i32
    %c0_i32_2 = arith.constant 0 : i32
    return %c0_i32, %c0_i32_0, %c0_i32_1 : i32, i32, i32
  }
  func.func @transform_6(%arg0: i32) -> (i32, i32) {
    %c0_i32 = arith.constant 0 : i32
    %c0_i32_0 = arith.constant 0 : i32
    return %c0_i32, %arg0 : i32, i32
  }
}

</mosaic_0001>

<bundles_post_ra>
// kernel: tpu_custom_call.1
= control target key start
LH: loop header
LB: loop body
LE: loop exit
PB: predicated region body
PF: predicated region fallthrough
CT: control target
= control target key end

     0   :  { %11 = vsyncpa [#allocation3], 0  ;;  %s2823_s0 = inlined_call_operand.vmem [shape: f32[4,512], index: 0, kind: input, shape index: {}]   ;;  %s2824_s1 = inlined_call_operand.hbm [shape: f32[2,4,36], index: 1, kind: input, shape index: {}]   ;;  %s2825_s2 = inlined_call_operand.vmem [shape: f32[2,4,1], index: 2, kind: input, shape index: {}]   ;;  %s2826_s3 = inlined_call_operand.vmem [shape: f32[2,4,36], index: 3, kind: input, shape index: {}]   ;;  %s2827_s4 = inlined_call_operand.vmem [shape: f32[2,4,1], index: 4, kind: input, shape index: {}]   ;;  %s2828_s5 = inlined_call_operand.hbm [shape: f32[8,1,512], index: 5, kind: input, shape index: {}]   ;;  %s2829_s6 = inlined_call_operand.hbm [shape: f32[4,512], index: 6, kind: output, shape index: {}]  }
   0x1   :  { %12 = vsyncpa [#allocation6], 0 }
   0x2   :  { %13 = vsyncpa [#allocation4], 0  ;;  %s1830_s21 = smov [#allocation2]  }
   0x3   :  { %s21_s22 = sshll.u32 %s1830_s21, 4  ;;  %s22_s22 = int_to_ptr.vmem [resolvable:$true] %s21_s22 }
   0x4   :  { %s1772_s23 = scalar_lea.vmem %s22_s22, 128  ;;  %p1777_p1 = scmp.lt.s32.totalorder %s22_s22, %s22_s22 }
   0x5   :  { %p1773_p0 = scmp.ne.s32.totalorder %s22_s22, %s1772_s23  ;;  %p1778_p2 = scmp.lt.s32.totalorder %s1772_s23, %s1772_s23 }
   0x7   :  { %p1779_p3 = por %p1778_p2, %p1777_p1 }
   0x9   :  { %p1780_p4 = pnand %p1779_p3, %p1773_p0 }
   0xb   :  { %1783 = shalt.err (!%p1780_p4)
}
   0xc   :  { %s1831_s24 = smov 64   ;;  %s1832_s25 = smov 4  }
   0xd   :  { %27 = dma.hbm_to_vmem [thread:$0]  %s2824_s1, 128, %s22_s22, [#allocation3], %s1831_s24, %s1831_s24, %s1832_s25  }
   0xe   :  { %s1833_s28 = smov [#allocation5]  }
   0xf   :  { %s39_s29 = sshll.u32 %s1833_s28, 4  ;;  %s40_s29 = int_to_ptr.vmem [resolvable:$true] %s39_s29 }
  0x10   :  { %s1792_s30 = scalar_lea.vmem %s40_s29, 512  ;;  %p1797_p6 = scmp.lt.s32.totalorder %s40_s29, %s40_s29 }
  0x11   :  { %p1793_p5 = scmp.ne.s32.totalorder %s40_s29, %s1792_s30  ;;  %p1798_p7 = scmp.lt.s32.totalorder %s1792_s30, %s1792_s30 }
  0x13   :  { %p1799_p8 = por %p1798_p7, %p1797_p6 }
  0x15   :  { %p1800_p9 = pnand %p1799_p8, %p1793_p5 }
  0x17   :  { %1803 = shalt.err (!%p1800_p9)
}
  0x18   :  { %45 = dma.hbm_to_vmem [thread:$0]  %s2828_s5, 512, %s40_s29, [#allocation6], %s1831_s24, %s1831_s24, %s1832_s25  }
  0x19   :  { %1824 = dma.done.wait [#allocation3], 128  }
  0x1a   :  { %1825 = vsyncadd [#allocation3], 4294967168 }
  0x1b   :  { %1826 = dma.done.wait [#allocation6], 512  }
  0x1c   :  { %1827 = vsyncadd [#allocation6], 4294966784  ;;  %v1889_v0 = vld [vmem:[%s2823_s0 + $0x8] sm:$0xff]  ;;  %v1894_v1 = vld [vmem:[%s2823_s0] sm:$0xff]  ;;  %s1834_s12 = smov 112   ;;  %s1835_s5 = smov 111   ;;  %v78_v9 = vlaneseq }
  0x1d   :  { %304 = vrot.lane.b32.xlu1 %v1889_v0, %s1834_s12  ;;  %300 = vrot.lane.b32.xlu0 %v1894_v1, %s1834_s12  ;;  %v1902_v2 = vcombine.high %v1889_v0, %v1889_v0  ;;  %v1910_v3 = vcombine.high %v1894_v1, %v1894_v1  ;;  %s1836_s0 = smov 127   ;;  %s1837_s13 = smov 113   ;;  %v2830_v4 = vmov 0.0   ;;  %v1842_v5 = vmov 0   ;;  %v63_v6 = vld [vmem:[%s2825_s2] sm:$0xf] }
  0x1e   :  { %s1838_s14 = smov 1   ;;  %s1839_s15 = smov 16   ;;  %526 = vmatprep.mubr.f32.mxu0 %v2830_v4  ;;  %597 = vmatprep.mubr.f32.mxu1 %v2830_v4  ;;  %v87_v10 = vshrl.u32 %v78_v9, 7  ;;  %v1973_v13 = vand.u32 127, %v78_v9  ;;  %v59_v20 = vld [vmem:[#allocation5 + $0x1c] sm:$0xf] }
  0x1f   :  { %s1840_s16 = smov 15   ;;  %1760 = vset.pattern.permute.xlu0 %v1842_v5  ;;  %1761 = vset.pattern.permute.xlu1 %v1842_v5  ;;  %s1843_s17 = smov 17   ;;  %vm424_vm1 = vcmask 1043456   ;;  %v58_v35 = vld [vmem:[#allocation5 + $0x18] sm:$0xf]  ;;  %vm446_vm9 = vcmask 293888  }
  0x20   :  { %v1975_v14 = vsub.s32 0, %v87_v10  ;;  %v1977_v15 = vsub.s32 2, %v87_v10  ;;  %v1979_v16 = vsub.s32 3, %v87_v10  ;;  %v1981_v18 = vsub.s32 1, %v87_v10  ;;  %v56_v41 = vld [vmem:[#allocation5 + $0x10] sm:$0xf] }
  0x21   :  { %306 = vrot.lane.b32.xlu1 %v1902_v2, %s1834_s12  ;;  %338 = vrot.lane.b32.xlu0 %v1894_v1, %s1835_s5  ;;  %vm346_vm0 = vcmp.lt.s32.totalorder %v1973_v13, 111  ;;  %vm308_vm2 = vcmp.lt.s32.totalorder %v1973_v13, 112  ;;  %vm232_vm3 = vcmp.lt.s32.totalorder %v1973_v13, 127  ;;  %vm270_vm4 = vcmp.lt.s32.totalorder %v1973_v13, 113  ;;  %v57_v53 = vld [vmem:[#allocation5 + $0x14] sm:$0xf] }
  0x22   :  { %v1985_v21 = vrot.slane %v59_v20, %v1981_v18  ;;  %v1988_v22 = vrot.slane %v59_v20, %v1979_v16  ;;  %v1991_v23 = vrot.slane %v59_v20, %v1977_v15  ;;  %v1994_v24 = vrot.slane %v59_v20, %v1975_v14 }
  0x23   :  { %v2014_v38 = vrot.slane %v58_v35, %v1977_v15  ;;  %v2017_v39 = vrot.slane %v58_v35, %v1979_v16  ;;  %v2020_v40 = vrot.slane %v58_v35, %v1981_v18  ;;  %v2028_v45 = vrot.slane %v56_v41, %v1979_v16 }
  0x24   :  { %v2033_v48 = vrot.slane %v58_v35, %v1975_v14  ;;  %v2038_v50 = vrot.slane %v56_v41, %v1975_v14  ;;  %v2041_v51 = vrot.slane %v56_v41, %v1981_v18  ;;  %v2044_v52 = vrot.slane %v56_v41, %v1977_v15 }
  0x25   :  { %340 = vrot.lane.b32.xlu1 %v1910_v3, %s1835_s5  ;;  %302 = vrot.lane.b32.xlu0 %v1910_v3, %s1834_s12  ;;  %2836 = vst [vmem:[#allocation11_spill] sm:$0xff] %v2017_v39  ;;  %v2060_v5 = vrot.slane %v57_v53, %v1975_v14  ;;  %v2069_v9 = vrot.slane %v57_v53, %v1981_v18  ;;  %vm194_vm5 = vcmp.lt.s32.totalorder %v1973_v13, 1  ;;  %vm118_vm6 = vcmp.lt.s32.totalorder %v1973_v13, 16 }
  0x26   :  { %2837 = vst [vmem:[#allocation12_spill] sm:$0xff] %v2038_v50  ;;  %v2072_v10 = vrot.slane %v57_v53, %v1977_v15  ;;  %vm156_vm7 = vcmp.lt.s32.totalorder %v1973_v13, 15  ;;  %vm80_vm8 = vcmp.lt.s32.totalorder %v1973_v13, 17 }
  0x29   :  { %344 = vrot.lane.b32.xlu1 %v1902_v2, %s1835_s5  ;;  %342 = vrot.lane.b32.xlu0 %v1889_v0, %s1835_s5 }
  0x2d   :  { %226 = vrot.lane.b32.xlu1 %v1910_v3, %s1836_s0  ;;  %224 = vrot.lane.b32.xlu0 %v1894_v1, %s1836_s0 }
  0x31   :  { %230 = vrot.lane.b32.xlu1 %v1902_v2, %s1836_s0  ;;  %228 = vrot.lane.b32.xlu0 %v1889_v0, %s1836_s0 }
  0x35   :  { %264 = vrot.lane.b32.xlu1 %v1910_v3, %s1837_s13  ;;  %262 = vrot.lane.b32.xlu0 %v1894_v1, %s1837_s13 }
  0x39   :  { %268 = vrot.lane.b32.xlu1 %v1902_v2, %s1837_s13  ;;  %266 = vrot.lane.b32.xlu0 %v1889_v0, %s1837_s13 }
  0x3d   :  { %188 = vrot.lane.b32.xlu1 %v1910_v3, %s1838_s14  ;;  %186 = vrot.lane.b32.xlu0 %v1894_v1, %s1838_s14 }
  0x41   :  { %192 = vrot.lane.b32.xlu1 %v1902_v2, %s1838_s14  ;;  %190 = vrot.lane.b32.xlu0 %v1889_v0, %s1838_s14 }
  0x45   :  { %112 = vrot.lane.b32.xlu1 %v1910_v3, %s1839_s15  ;;  %110 = vrot.lane.b32.xlu0 %v1894_v1, %s1839_s15 }
  0x49   :  { %116 = vrot.lane.b32.xlu1 %v1902_v2, %s1839_s15  ;;  %114 = vrot.lane.b32.xlu0 %v1889_v0, %s1839_s15 }
  0x4d   :  { %150 = vrot.lane.b32.xlu1 %v1910_v3, %s1840_s16  ;;  %148 = vrot.lane.b32.xlu0 %v1894_v1, %s1840_s16 }
  0x51   :  { %154 = vrot.lane.b32.xlu1 %v1902_v2, %s1840_s16  ;;  %152 = vrot.lane.b32.xlu0 %v1889_v0, %s1840_s16 }
  0x55   :  { %72 = vrot.lane.b32.xlu1 %v1910_v3, %s1843_s17  ;;  %70 = vrot.lane.b32.xlu0 %v1894_v1, %s1843_s17 }
  0x59   :  { %76 = vrot.lane.b32.xlu1 %v1902_v2, %s1843_s17  ;;  %74 = vrot.lane.b32.xlu0 %v1889_v0, %s1843_s17 }
  0x5d   :  { %443 = vperm.xlu0 %1760, %v63_v6   ;;  %v2063_v6 = vrot.slane %v57_v53, %v1979_v16 }
  0x8f   :  { %v305_v7 = vpop.permute.xlu1 %304  ;;  %v301_v8 = vpop.permute.xlu0 %300 }
  0x93   :  { %v307_v11 = vpop.permute.xlu1 %306  ;;  %v339_v12 = vpop.permute.xlu0 %338 }
  0x94   :  { %v309_v42 = vsel %vm308_vm2, %v305_v7, %v307_v11  ;;  %v312_v43 = vsel %vm308_vm2, %v307_v11, %v301_v8 }
  0x95   :  { %v336_v54 = vmul.f32 %v2014_v38, %v309_v42  ;;  %v337_v55 = vmul.f32 %v2017_v39, %v312_v43 }
  0x97   :  { %v341_v17 = vpop.permute.xlu1 %340  ;;  %v303_v19 = vpop.permute.xlu0 %302  ;;  %v419_v20 = vrot.slane %v337_v55, 4 }
  0x98   :  { %v349_v25 = vsel %vm346_vm0, %v339_v12, %v341_v17  ;;  %v310_v47 = vsel %vm308_vm2, %v303_v19, %v305_v7  ;;  %v311_v56 = vsel %vm308_vm2, %v301_v8, %v303_v19  ;;  %v418_v19 = vrot.slane %v336_v54, 4 }
  0x99   :  { %v372_v34 = vmul.f32 %v1994_v24, %v349_v25  ;;  %v335_v58 = vmul.f32 %v2020_v40, %v310_v47  ;;  %v334_v11 = vmul.f32 %v2033_v48, %v311_v56 }
  0x9b   :  { %v345_v26 = vpop.permute.xlu1 %344  ;;  %v343_v27 = vpop.permute.xlu0 %342  ;;  %v417_v25 = vrot.slane %v335_v58, 4 }
  0x9c   :  { %v347_v28 = vsel %vm346_vm0, %v343_v27, %v345_v26  ;;  %v348_v29 = vsel %vm346_vm0, %v341_v17, %v343_v27  ;;  %v350_v30 = vsel %vm346_vm0, %v345_v26, %v339_v12 }
  0x9d   :  { %v373_v31 = vmul.f32 %v1985_v21, %v348_v29  ;;  %v375_v32 = vmul.f32 %v1988_v22, %v350_v30  ;;  %v374_v33 = vmul.f32 %v1991_v23, %v347_v28 }
  0x9f   :  { %v227_v36 = vpop.permute.xlu1 %226  ;;  %v225_v37 = vpop.permute.xlu0 %224  ;;  %1718 = vmatprep.subr.msk.mxu0 %vm424_vm1, %v373_v31  ;;  %1721 = vmatprep.subr.msk.mxu1 %vm424_vm1, %v375_v32 }
  0xa0   :  { %1719 = vmatpush1.msk.msra.mxu0 %vm424_vm1, %v372_v34  ;;  %1722 = vmatpush1.msk.msra.mxu1 %vm424_vm1, %v374_v33  ;;  %v235_v59 = vsel %vm232_vm3, %v225_v37, %v227_v36 }
  0xa1   :  { %v258_v12 = vmul.f32 %v2038_v50, %v235_v59 }
  0xa3   :  { %v231_v44 = vpop.permute.xlu1 %230  ;;  %v229_v46 = vpop.permute.xlu0 %228  ;;  %v404_v41 = vrot.slane %v258_v12, 4 }
  0xa4   :  { %v236_v49 = vsel %vm232_vm3, %v231_v44, %v225_v37  ;;  %v234_v57 = vsel %vm232_vm3, %v227_v36, %v229_v46  ;;  %v233_v61 = vsel %vm232_vm3, %v229_v46, %v231_v44  ;;  %v416_v37 = vrot.slane %v334_v11, 4  ;;  %v54_v11 = vld [vmem:[#allocation5 + $0x8] sm:$0xf] }
  0xa5   :  { %v261_v60 = vmul.f32 %v2028_v45, %v236_v49  ;;  %v259_v7 = vmul.f32 %v2041_v51, %v234_v57  ;;  %v260_v17 = vmul.f32 %v2044_v52, %v233_v61  ;;  %v433_v56 = vsel %vm424_vm1, %v1894_v1, %v404_v41  ;;  %v52_v41 = vld [vmem:[#allocation5] sm:$0xf] }
  0xa7   :  { %v265_v62 = vpop.permute.xlu1 %264  ;;  %v263_v63 = vpop.permute.xlu0 %262  ;;  %v407_v26 = vrot.slane %v261_v60, 4  ;;  %v405_v33 = vrot.slane %v259_v7, 4  ;;  %v406_v42 = vrot.slane %v260_v17, 4  ;;  %v55_v60 = vld [vmem:[#allocation5 + $0xc] sm:$0xf] }
  0xa8   :  { %v273_v8 = vsel %vm270_vm4, %v263_v63, %v265_v62  ;;  %v2111_v17 = vrot.slane %v55_v60, %v1977_v15 }
  0xa9   :  { %v296_v29 = vmul.f32 %v2060_v5, %v273_v8  ;;  %v434_v54 = vsel %vm424_vm1, %v1910_v3, %v405_v33  ;;  %v436_v55 = vsel %vm424_vm1, %v1902_v2, %v407_v26  ;;  %v435_v57 = vsel %vm424_vm1, %v1889_v0, %v406_v42 }
  0xaa   :  { %v2106_v8 = vrot.slane %v55_v60, %v1975_v14 }
  0xab   :  { %v269_v27 = vpop.permute.xlu1 %268  ;;  %v267_v28 = vpop.permute.xlu0 %266  ;;  %v437_v53 = vsel %vm424_vm1, %v296_v29, %v416_v37 }
  0xac   :  { %v274_v30 = vsel %vm270_vm4, %v269_v27, %v263_v63  ;;  %v271_v31 = vsel %vm270_vm4, %v267_v28, %v269_v27  ;;  %v272_v32 = vsel %vm270_vm4, %v265_v62, %v267_v28  ;;  %v2101_v63 = vrot.slane %v55_v60, %v1981_v18  ;;  %v53_v28 = vld [vmem:[#allocation5 + $0x4] sm:$0xf] }
  0xad   :  { %v299_v34 = vmul.f32 %v2063_v6, %v274_v30  ;;  %v297_v35 = vmul.f32 %v2069_v9, %v272_v32  ;;  %v298_v36 = vmul.f32 %v2072_v10, %v271_v31  ;;  %v2124_v30 = vrot.slane %v54_v11, %v1981_v18 }
  0xaf   :  { %v189_v43 = vpop.permute.xlu1 %188  ;;  %v187_v44 = vpop.permute.xlu0 %186  ;;  %v438_v46 = vsel %vm424_vm1, %v297_v35, %v417_v25  ;;  %v440_v47 = vsel %vm424_vm1, %v299_v34, %v419_v20  ;;  %v439_v49 = vsel %vm424_vm1, %v298_v36, %v418_v19  ;;  %v2114_v19 = vrot.slane %v55_v60, %v1979_v16 }
  0xb0   :  { %486 = vmatprep.subr.mxu0 %v438_v46  ;;  %557 = vmatprep.subr.mxu1 %v440_v47  ;;  %v197_v7 = vsel %vm194_vm5, %v187_v44, %v189_v43  ;;  %v2130_v34 = vrot.slane %v53_v28, %v1981_v18  ;;  %v2133_v35 = vrot.slane %v53_v28, %v1975_v14 }
  0xb1   :  { %487 = vmatpush1.msra.mxu0 %v437_v53  ;;  %558 = vmatpush1.msra.mxu1 %v439_v49  ;;  %v221_v29 = vmul.f32 %v2101_v63, %v197_v7  ;;  %v2143_v46 = vrot.slane %v54_v11, %v1975_v14  ;;  %v2147_v53 = vrot.slane %v54_v11, %v1977_v15 }
  0xb2   :  { %488 = vmatprep.subr.mxu0 %v434_v54  ;;  %559 = vmatprep.subr.mxu1 %v436_v55  ;;  %v2150_v54 = vrot.slane %v54_v11, %v1979_v16 }
  0xb3   :  { %v193_v58 = vpop.permute.xlu1 %192  ;;  %v191_v59 = vpop.permute.xlu0 %190  ;;  %489 = vmatpush1.msra.mxu0 %v433_v56  ;;  %560 = vmatpush1.msra.mxu1 %v435_v57  ;;  %v393_v47 = vrot.slane %v221_v29, 4  ;;  %v2153_v56 = vrot.slane %v53_v28, %v1979_v16  ;;  %v2157_v57 = vrot.slane %v52_v41, %v1981_v18 }
  0xb4   :  { %v198_v12 = vsel %vm194_vm5, %v193_v58, %v187_v44  ;;  %v195_v26 = vsel %vm194_vm5, %v191_v59, %v193_v58  ;;  %v196_v27 = vsel %vm194_vm5, %v189_v43, %v191_v59  ;;  %v2138_v43 = vrot.slane %v53_v28, %v1977_v15 }
  0xb5   :  { %v220_v31 = vmul.f32 %v2106_v8, %v198_v12  ;;  %v222_v32 = vmul.f32 %v2111_v17, %v196_v27  ;;  %v223_v33 = vmul.f32 %v2114_v19, %v195_v26 }
  0xb7   :  { %v113_v61 = vpop.permute.xlu1 %112  ;;  %v111_v62 = vpop.permute.xlu0 %110  ;;  %v392_v55 = vrot.slane %v220_v31, 4  ;;  %v394_v58 = vrot.slane %v222_v32, 4  ;;  %v395_v59 = vrot.slane %v223_v33, 4 }
  0xb8   :  { %v121_v42 = vsel %vm118_vm6, %v111_v62, %v113_v61 }
  0xb9   :  { %v145_v60 = vmul.f32 %v2130_v34, %v121_v42 }
  0xbb   :  { %v117_v20 = vpop.permute.xlu1 %116  ;;  %v115_v25 = vpop.permute.xlu0 %114 }
  0xbc   :  { %v122_v11 = vsel %vm118_vm6, %v117_v20, %v111_v62  ;;  %v120_v29 = vsel %vm118_vm6, %v113_v61, %v115_v25  ;;  %v119_v62 = vsel %vm118_vm6, %v115_v25, %v117_v20  ;;  %v381_v20 = vrot.slane %v145_v60, 4 }
  0xbd   :  { %v144_v42 = vmul.f32 %v2133_v35, %v122_v11  ;;  %v147_v25 = vmul.f32 %v2153_v56, %v119_v62 }
  0xbf   :  { %v151_v36 = vpop.permute.xlu1 %150  ;;  %v149_v37 = vpop.permute.xlu0 %148 }
  0xc0   :  { %v159_v44 = vsel %vm156_vm7, %v149_v37, %v151_v36 }
  0xc1   :  { %v183_v49 = vmul.f32 %v2124_v30, %v159_v44 }
  0xc3   :  { %v155_v7 = vpop.permute.xlu1 %154  ;;  %v153_v12 = vpop.permute.xlu0 %152  ;;  %v430_v26 = vsel %vm424_vm1, %v183_v49, %v393_v47 }
  0xc4   :  { %v160_v27 = vsel %vm156_vm7, %v155_v7, %v149_v37  ;;  %v157_v28 = vsel %vm156_vm7, %v153_v12, %v155_v7  ;;  %v158_v18 = vsel %vm156_vm7, %v151_v36, %v153_v12  ;;  %490 = vmatprep.subr.mxu0 %v430_v26  ;;  %v2177_v37 = vrot.slane %v52_v41, %v1975_v14 }
  0xc5   :  { %v182_v31 = vmul.f32 %v2143_v46, %v160_v27  ;;  %v184_v32 = vmul.f32 %v2147_v53, %v158_v18  ;;  %v185_v33 = vmul.f32 %v2150_v54, %v157_v28  ;;  %v146_v7 = vmul.f32 %v2138_v43, %v120_v29 }
  0xc6   :  { %v2187_v14 = vrot.slane %v52_v41, %v1977_v15  ;;  %v383_v29 = vrot.slane %v147_v25, 4 }
  0xc7   :  { %v73_v44 = vpop.permute.xlu1 %72  ;;  %v71_v36 = vpop.permute.xlu0 %70  ;;  %v429_v47 = vsel %vm424_vm1, %v182_v31, %v392_v55  ;;  %v432_v61 = vsel %vm424_vm1, %v185_v33, %v395_v59  ;;  %v431_v49 = vsel %vm424_vm1, %v184_v32, %v394_v58  ;;  %v2192_v55 = vrot.slane %v52_v41, %v1979_v16  ;;  %v62_v32 = vld [vmem:[#allocation2] sm:$0xf] }
  0xc8   :  { %v83_v12 = vsel %vm80_vm8, %v71_v36, %v73_v44  ;;  %491 = vmatpush1.msra.mxu0 %v429_v47  ;;  %561 = vmatprep.subr.mxu1 %v432_v61  ;;  %v380_v58 = vrot.slane %v144_v42, 4  ;;  %v382_v28 = vrot.slane %v146_v7, 4 }
  0xc9   :  { %v107_v26 = vmul.f32 %v2157_v57, %v83_v12  ;;  %562 = vmatpush1.msra.mxu1 %v431_v49 }
  0xcb   :  { %v77_v59 = vpop.permute.xlu1 %76  ;;  %v75_v11 = vpop.permute.xlu0 %74  ;;  %v426_v27 = vsel %vm424_vm1, %v107_v26, %v381_v20 }
  0xcc   :  { %v84_v18 = vsel %vm80_vm8, %v77_v59, %v71_v36  ;;  %v81_v15 = vsel %vm80_vm8, %v75_v11, %v77_v59  ;;  %v82_v60 = vsel %vm80_vm8, %v73_v44, %v75_v11  ;;  %492 = vmatprep.subr.mxu0 %v426_v27  ;;  %v609_v27 = vld [vmem:[%s2827_s4] sm:$0xf] }
  0xcd   :  { %v106_v16 = vmul.f32 %v2177_v37, %v84_v18  ;;  %v108_v41 = vmul.f32 %v2187_v14, %v82_v60  ;;  %v109_v31 = vmul.f32 %v2192_v55, %v81_v15 }
  0xcf   :  { %v425_v33 = vsel %vm424_vm1, %v106_v16, %v380_v58  ;;  %v428_v62 = vsel %vm424_vm1, %v109_v31, %v383_v29  ;;  %v427_v42 = vsel %vm424_vm1, %v108_v41, %v382_v28 }
  0xd0   :  { %493 = vmatpush1.msra.mxu0 %v425_v33  ;;  %563 = vmatprep.subr.mxu1 %v428_v62 }
  0xd1   :  { %1720 = vmatmul.mubr.msk.f32.vlgmr.msra.gmra.mxu0 %vm446_vm9, %v62_v32  ;;  %564 = vmatpush1.msra.mxu1 %v427_v42 }
  0xd2   :  { %1723 = vmatmul.mubr.msk.f32.vlgmr.msra.gmra.mxu1 %vm446_vm9, %v62_v32  ;;  %886 = vmatprep.mubr.f32.mxu0 %v2830_v4 }
  0xd3   :  { %957 = vmatprep.mubr.f32.mxu1 %v2830_v4 }
  0xd8   :  { %v444_v44 = vpop.permute.xlu0 %443 }
 0x191   :  { %v528_v36 = vpop.f32.mrf.mxu0 }
 0x192   :  { %v529_v47 = vadd.f32 %v528_v36, %v444_v44  ;;  %v599_v61 = vpop.f32.mrf.mxu1 }
 0x193   :  { %v600_v49 = vadd.f32 %v599_v61, %v444_v44  ;;  %v530_v7 = vpop.f32.mrf.mxu0 }
 0x194   :  { %v2211_v12 = vmax.f32 %v529_v47, 0.0  ;;  %v531_v20 = vadd.f32 %v530_v7, %v444_v44  ;;  %v601_v26 = vpop.f32.mrf.mxu1 }
 0x195   :  { %v2213_v25 = vmax.f32 %v600_v49, 0.0  ;;  %v602_v59 = vadd.f32 %v601_v26, %v444_v44 }
 0x196   :  { %706 = vrot.lane.b32.xlu1 %v2211_v12, %s1834_s12  ;;  %v2219_v58 = vmax.f32 %v531_v20, 0.0 }
 0x197   :  { %710 = vrot.lane.b32.xlu0 %v2213_v25, %s1834_s12  ;;  %v2225_v11 = vmax.f32 %v602_v59, 0.0 }
 0x19a   :  { %708 = vrot.lane.b32.xlu1 %v2219_v58, %s1834_s12 }
 0x19b   :  { %722 = vrot.lane.b32.xlu0 %v2211_v12, %s1835_s5 }
 0x19e   :  { %712 = vrot.lane.b32.xlu1 %v2225_v11, %s1834_s12 }
 0x19f   :  { %726 = vrot.lane.b32.xlu0 %v2213_v25, %s1835_s5 }
 0x1a2   :  { %724 = vrot.lane.b32.xlu1 %v2219_v58, %s1835_s5 }
 0x1a3   :  { %674 = vrot.lane.b32.xlu0 %v2211_v12, %s1836_s0 }
 0x1a6   :  { %728 = vrot.lane.b32.xlu1 %v2225_v11, %s1835_s5 }
 0x1a7   :  { %678 = vrot.lane.b32.xlu0 %v2213_v25, %s1836_s0 }
 0x1aa   :  { %676 = vrot.lane.b32.xlu1 %v2219_v58, %s1836_s0 }
 0x1ab   :  { %690 = vrot.lane.b32.xlu0 %v2211_v12, %s1837_s13 }
 0x1ae   :  { %680 = vrot.lane.b32.xlu1 %v2225_v11, %s1836_s0 }
 0x1af   :  { %694 = vrot.lane.b32.xlu0 %v2213_v25, %s1837_s13 }
 0x1b2   :  { %692 = vrot.lane.b32.xlu1 %v2219_v58, %s1837_s13 }
 0x1b3   :  { %658 = vrot.lane.b32.xlu0 %v2211_v12, %s1838_s14 }
 0x1b6   :  { %696 = vrot.lane.b32.xlu1 %v2225_v11, %s1837_s13 }
 0x1b7   :  { %662 = vrot.lane.b32.xlu0 %v2213_v25, %s1838_s14 }
 0x1ba   :  { %660 = vrot.lane.b32.xlu1 %v2219_v58, %s1838_s14 }
 0x1bb   :  { %626 = vrot.lane.b32.xlu0 %v2211_v12, %s1839_s15 }
 0x1be   :  { %664 = vrot.lane.b32.xlu1 %v2225_v11, %s1838_s14 }
 0x1bf   :  { %630 = vrot.lane.b32.xlu0 %v2213_v25, %s1839_s15 }
 0x1c2   :  { %628 = vrot.lane.b32.xlu1 %v2219_v58, %s1839_s15 }
 0x1c3   :  { %642 = vrot.lane.b32.xlu0 %v2211_v12, %s1840_s16 }
 0x1c6   :  { %632 = vrot.lane.b32.xlu1 %v2225_v11, %s1839_s15 }
 0x1c7   :  { %646 = vrot.lane.b32.xlu0 %v2213_v25, %s1840_s16 }
 0x1ca   :  { %644 = vrot.lane.b32.xlu1 %v2219_v58, %s1840_s16 }
 0x1cb   :  { %610 = vrot.lane.b32.xlu0 %v2211_v12, %s1843_s17 }
 0x1ce   :  { %648 = vrot.lane.b32.xlu1 %v2225_v11, %s1840_s16 }
 0x1cf   :  { %614 = vrot.lane.b32.xlu0 %v2213_v25, %s1843_s17 }
 0x1d2   :  { %612 = vrot.lane.b32.xlu1 %v2219_v58, %s1843_s17 }
 0x1d3   :  { %804 = vperm.xlu0 %1760, %v609_v27  }
 0x1d6   :  { %616 = vrot.lane.b32.xlu1 %v2225_v11, %s1843_s17 }
 0x208   :  { %v707_v28 = vpop.permute.xlu1 %706 }
 0x209   :  { %v711_v18 = vpop.permute.xlu0 %710 }
 0x20c   :  { %v709_v15 = vpop.permute.xlu1 %708 }
 0x20d   :  { %v723_v60 = vpop.permute.xlu0 %722  ;;  %v715_v26 = vsel %vm308_vm2, %v709_v15, %v711_v18  ;;  %v716_v59 = vsel %vm308_vm2, %v707_v28, %v709_v15 }
 0x210   :  { %v713_v29 = vpop.permute.xlu1 %712 }
 0x211   :  { %v727_v16 = vpop.permute.xlu0 %726  ;;  %v717_v15 = vsel %vm308_vm2, %v713_v29, %v707_v28 }
 0x214   :  { %v725_v41 = vpop.permute.xlu1 %724 }
 0x215   :  { %v731_v31 = vsel %vm346_vm0, %v725_v41, %v727_v16  ;;  %v732_v32 = vsel %vm346_vm0, %v723_v60, %v725_v41  ;;  %v675_v33 = vpop.permute.xlu0 %674  ;;  %v719_v41 = vmul.f32 %v715_v26, %v2020_v40 }
 0x216   :  { %v734_v62 = vmul.f32 %v732_v32, %v1994_v24  ;;  %v735_v42 = vmul.f32 %v731_v31, %v1985_v21 }
 0x218   :  { %1724 = vmatprep.subr.msk.mxu0 %vm424_vm1, %v735_v42  ;;  %v729_v44 = vpop.permute.xlu1 %728  ;;  %v714_v42 = vsel %vm308_vm2, %v711_v18, %v713_v29  ;;  %v721_v18 = vmul.f32 %v717_v15, %v2017_v39 }
 0x219   :  { %v730_v36 = vsel %vm346_vm0, %v727_v16, %v729_v44  ;;  %v733_v47 = vsel %vm346_vm0, %v729_v44, %v723_v60  ;;  %v679_v61 = vpop.permute.xlu0 %678  ;;  %1725 = vmatpush1.msk.msra.mxu0 %vm424_vm1, %v734_v62  ;;  %v718_v16 = vmul.f32 %v716_v59, %v2033_v48  ;;  %v720_v59 = vmul.f32 %v714_v42, %v2014_v38 }
 0x21a   :  { %v736_v49 = vmul.f32 %v730_v36, %v1991_v23  ;;  %v737_v7 = vmul.f32 %v733_v47, %v1988_v22  ;;  %v781_v39 = vrot.slane %v721_v18, 4 }
 0x21c   :  { %1727 = vmatprep.subr.msk.mxu1 %vm424_vm1, %v737_v7  ;;  %v677_v20 = vpop.permute.xlu1 %676  ;;  %v779_v7 = vrot.slane %v719_v41, 4 }
 0x21d   :  { %v691_v27 = vpop.permute.xlu0 %690  ;;  %1728 = vmatpush1.msk.msra.mxu1 %vm424_vm1, %v736_v49  ;;  %v683_v60 = vsel %vm232_vm3, %v677_v20, %v679_v61  ;;  %v684_v31 = vsel %vm232_vm3, %v675_v33, %v677_v20  ;;  %v778_v49 = vrot.slane %v718_v16, 4 }
 0x21e   :  { %v687_v44 = vmul.f32 %v683_v60, %v2041_v51  ;;  %v686_v36 = vmul.f32 %v684_v31, %v2038_v50  ;;  %v780_v50 = vrot.slane %v720_v59, 4 }
 0x220   :  { %v681_v32 = vpop.permute.xlu1 %680  ;;  %v767_v31 = vrot.slane %v687_v44, 4 }
 0x221   :  { %v695_v62 = vpop.permute.xlu0 %694  ;;  %v685_v47 = vsel %vm232_vm3, %v681_v32, %v675_v33  ;;  %v682_v20 = vsel %vm232_vm3, %v679_v61, %v681_v32  ;;  %v766_v61 = vrot.slane %v686_v36, 4 }
 0x222   :  { %v689_v33 = vmul.f32 %v685_v47, %v2028_v45  ;;  %v688_v32 = vmul.f32 %v682_v20, %v2044_v52 }
 0x223   :  { %v794_v59 = vsel %vm424_vm1, %v2211_v12, %v766_v61 }
 0x224   :  { %v693_v26 = vpop.permute.xlu1 %692 }
 0x225   :  { %v699_v28 = vsel %vm270_vm4, %v693_v26, %v695_v62  ;;  %v700_v29 = vsel %vm270_vm4, %v691_v27, %v693_v26  ;;  %v659_v60 = vpop.permute.xlu0 %658 }
 0x226   :  { %v702_v16 = vmul.f32 %v700_v29, %v2060_v5  ;;  %v703_v41 = vmul.f32 %v699_v28, %v2069_v9  ;;  %v769_v29 = vrot.slane %v689_v33, 4 }
 0x228   :  { %v697_v42 = vpop.permute.xlu1 %696  ;;  %v799_v15 = vsel %vm424_vm1, %v703_v41, %v779_v7  ;;  %v798_v4 = vsel %vm424_vm1, %v702_v16, %v778_v49  ;;  %v795_v7 = vsel %vm424_vm1, %v2219_v58, %v767_v31  ;;  %v768_v49 = vrot.slane %v688_v32, 4 }
 0x229   :  { %v698_v26 = vsel %vm270_vm4, %v695_v62, %v697_v42  ;;  %v701_v44 = vsel %vm270_vm4, %v697_v42, %v691_v27  ;;  %v663_v47 = vpop.permute.xlu0 %662  ;;  %846 = vmatprep.subr.mxu0 %v799_v15 }
 0x22a   :  { %v704_v36 = vmul.f32 %v698_v26, %v2072_v10  ;;  %v705_v20 = vmul.f32 %v701_v44, %v2063_v6  ;;  %847 = vmatpush1.msra.mxu0 %v798_v4  ;;  %v797_v4 = vsel %vm424_vm1, %v2225_v11, %v769_v29  ;;  %v796_v58 = vsel %vm424_vm1, %v2213_v25, %v768_v49 }
 0x22b   :  { %848 = vmatprep.subr.mxu0 %v795_v7 }
 0x22c   :  { %849 = vmatpush1.msra.mxu0 %v794_v59  ;;  %v661_v62 = vpop.permute.xlu1 %660  ;;  %v801_v27 = vsel %vm424_vm1, %v705_v20, %v781_v39  ;;  %v800_v18 = vsel %vm424_vm1, %v704_v36, %v780_v50 }
 0x22d   :  { %v627_v28 = vpop.permute.xlu0 %626  ;;  %917 = vmatprep.subr.mxu1 %v801_v27  ;;  %v668_v39 = vsel %vm194_vm5, %v659_v60, %v661_v62  ;;  %v667_v25 = vsel %vm194_vm5, %v661_v62, %v663_v47 }
 0x22e   :  { %918 = vmatpush1.msra.mxu1 %v800_v18  ;;  %v671_v50 = vmul.f32 %v668_v39, %v2101_v63  ;;  %v672_v7 = vmul.f32 %v667_v25, %v2111_v17 }
 0x22f   :  { %919 = vmatprep.subr.mxu1 %v797_v4 }
 0x230   :  { %920 = vmatpush1.msra.mxu1 %v796_v58  ;;  %v665_v31 = vpop.permute.xlu1 %664  ;;  %v755_v15 = vrot.slane %v671_v50, 4 }
 0x231   :  { %v631_v33 = vpop.permute.xlu0 %630  ;;  %v669_v32 = vsel %vm194_vm5, %v665_v31, %v659_v60  ;;  %v666_v11 = vsel %vm194_vm5, %v663_v47, %v665_v31 }
 0x232   :  { %v670_v26 = vmul.f32 %v669_v32, %v2106_v8  ;;  %v673_v29 = vmul.f32 %v666_v11, %v2114_v19  ;;  %v756_v32 = vrot.slane %v672_v7, 4 }
 0x234   :  { %v629_v12 = vpop.permute.xlu1 %628  ;;  %v754_v58 = vrot.slane %v670_v26, 4  ;;  %v757_v31 = vrot.slane %v673_v29, 4 }
 0x235   :  { %v643_v16 = vpop.permute.xlu0 %642  ;;  %v636_v36 = vsel %vm118_vm6, %v627_v28, %v629_v12 }
 0x236   :  { %v639_v62 = vmul.f32 %v636_v36, %v2130_v34 }
 0x238   :  { %v633_v41 = vpop.permute.xlu1 %632  ;;  %v743_v26 = vrot.slane %v639_v62, 4 }
 0x239   :  { %v647_v61 = vpop.permute.xlu0 %646  ;;  %v634_v11 = vsel %vm118_vm6, %v631_v33, %v633_v41  ;;  %v637_v25 = vsel %vm118_vm6, %v633_v41, %v627_v28 }
 0x23a   :  { %v641_v28 = vmul.f32 %v634_v11, %v2153_v56  ;;  %v2838_v11 = vmov 0.0  }
 0x23c   :  { %v645_v42 = vpop.permute.xlu1 %644 }
 0x23d   :  { %v652_v44 = vsel %vm156_vm7, %v643_v16, %v645_v42  ;;  %v651_v60 = vsel %vm156_vm7, %v645_v42, %v647_v61  ;;  %v611_v47 = vpop.permute.xlu0 %610 }
 0x23e   :  { %v655_v20 = vmul.f32 %v652_v44, %v2124_v30  ;;  %v656_v27 = vmul.f32 %v651_v60, %v2147_v53  ;;  %v638_v60 = vmul.f32 %v637_v25, %v2133_v35 }
 0x240   :  { %v649_v49 = vpop.permute.xlu1 %648  ;;  %v791_v59 = vsel %vm424_vm1, %v655_v20, %v755_v15  ;;  %v792_v36 = vsel %vm424_vm1, %v656_v27, %v756_v32  ;;  %v742_v27 = vrot.slane %v638_v60, 4 }
 0x241   :  { %v650_v18 = vsel %vm156_vm7, %v647_v61, %v649_v49  ;;  %v653_v4 = vsel %vm156_vm7, %v649_v49, %v643_v16  ;;  %850 = vmatprep.subr.mxu0 %v791_v59  ;;  %v635_v61 = vsel %vm118_vm6, %v629_v12, %v631_v33  ;;  %v615_v44 = vpop.permute.xlu0 %614 }
 0x242   :  { %v654_v39 = vmul.f32 %v653_v4, %v2143_v46  ;;  %v657_v50 = vmul.f32 %v650_v18, %v2150_v54  ;;  %v640_v41 = vmul.f32 %v635_v61, %v2138_v43  ;;  %v745_v18 = vrot.slane %v641_v28, 4 }
 0x244   :  { %v613_v42 = vpop.permute.xlu1 %612  ;;  %v790_v16 = vsel %vm424_vm1, %v654_v39, %v754_v58  ;;  %v793_v15 = vsel %vm424_vm1, %v657_v50, %v757_v31  ;;  %v744_v31 = vrot.slane %v640_v41, 4  ;;  %v608_v39 = vld [vmem:[%s2826_s3] sm:$0xf] }
 0x245   :  { %v620_v29 = vsel %vm80_vm8, %v611_v47, %v613_v42  ;;  %851 = vmatpush1.msra.mxu0 %v790_v16  ;;  %921 = vmatprep.subr.mxu1 %v793_v15  ;;  %v619_v33 = vsel %vm80_vm8, %v613_v42, %v615_v44 }
 0x246   :  { %v623_v12 = vmul.f32 %v620_v29, %v2157_v57  ;;  %922 = vmatpush1.msra.mxu1 %v792_v36  ;;  %v624_v49 = vmul.f32 %v619_v33, %v2187_v14 }
 0x248   :  { %v617_v20 = vpop.permute.xlu1 %616  ;;  %v787_v7 = vsel %vm424_vm1, %v623_v12, %v743_v26 }
 0x249   :  { %v618_v59 = vsel %vm80_vm8, %v615_v44, %v617_v20  ;;  %v621_v62 = vsel %vm80_vm8, %v617_v20, %v611_v47  ;;  %852 = vmatprep.subr.mxu0 %v787_v7  ;;  %v788_v47 = vsel %vm424_vm1, %v624_v49, %v744_v31 }
 0x24a   :  { %v622_v4 = vmul.f32 %v621_v62, %v2177_v37  ;;  %v625_v58 = vmul.f32 %v618_v59, %v2192_v55 }
 0x24c   :  { %v786_v50 = vsel %vm424_vm1, %v622_v4, %v742_v27  ;;  %v789_v32 = vsel %vm424_vm1, %v625_v58, %v745_v18 }
 0x24d   :  { %853 = vmatpush1.msra.mxu0 %v786_v50  ;;  %923 = vmatprep.subr.mxu1 %v789_v32 }
 0x24e   :  { %1726 = vmatmul.mubr.msk.f32.vlgmr.msra.gmra.mxu0 %vm446_vm9, %v608_v39  ;;  %924 = vmatpush1.msra.mxu1 %v788_v47  ;;  %v805_v25 = vpop.permute.xlu0 %804 }
 0x24f   :  { %1729 = vmatmul.mubr.msk.f32.vlgmr.msra.gmra.mxu1 %vm446_vm9, %v608_v39  ;;  %1248 = vmatprep.mubr.f32.mxu0 %v2838_v11 }
 0x250   :  { %1319 = vmatprep.mubr.f32.mxu1 %v2838_v11 }
 0x30e   :  { %v888_v61 = vpop.f32.mrf.mxu0 }
 0x30f   :  { %v889_v42 = vadd.f32 %v888_v61, %v805_v25  ;;  %v959_v16 = vpop.f32.mrf.mxu1 }
 0x310   :  { %v890_v15 = vpop.f32.mrf.mxu0  ;;  %v960_v44 = vadd.f32 %v959_v16, %v805_v25 }
 0x311   :  { %v2414_v26 = vadd.f32 %v889_v42, %v1894_v1  ;;  %v891_v29 = vadd.f32 %v890_v15, %v805_v25  ;;  %v961_v36 = vpop.f32.mrf.mxu1 }
 0x312   :  { %v962_v28 = vadd.f32 %v961_v36, %v805_v25  ;;  %v2422_v33 = vadd.f32 %v960_v44, %v1889_v0  ;;  %v1730_v0 = vld [vmem:[%s2825_s2 + $0x4] sm:$0xf] }
 0x313   :  { %v2417_v60 = vadd.f32 %v891_v29, %v1910_v3  ;;  %1068 = vrot.lane.b32.xlu1 %v2414_v26, %s1834_s12 }
 0x314   :  { %v2427_v12 = vadd.f32 %v962_v28, %v1902_v2 }
 0x315   :  { %1070 = vrot.lane.b32.xlu0 %v2417_v60, %s1834_s12 }
 0x317   :  { %1072 = vrot.lane.b32.xlu1 %v2422_v33, %s1834_s12 }
 0x319   :  { %1074 = vrot.lane.b32.xlu0 %v2427_v12, %s1834_s12 }
 0x31b   :  { %1084 = vrot.lane.b32.xlu1 %v2414_v26, %s1835_s5 }
 0x31d   :  { %1086 = vrot.lane.b32.xlu0 %v2417_v60, %s1835_s5 }
 0x31f   :  { %1088 = vrot.lane.b32.xlu1 %v2422_v33, %s1835_s5 }
 0x321   :  { %1090 = vrot.lane.b32.xlu0 %v2427_v12, %s1835_s5 }
 0x323   :  { %1036 = vrot.lane.b32.xlu1 %v2414_v26, %s1836_s0 }
 0x325   :  { %1038 = vrot.lane.b32.xlu0 %v2417_v60, %s1836_s0 }
 0x327   :  { %1040 = vrot.lane.b32.xlu1 %v2422_v33, %s1836_s0 }
 0x329   :  { %1042 = vrot.lane.b32.xlu0 %v2427_v12, %s1836_s0 }
 0x32b   :  { %1052 = vrot.lane.b32.xlu1 %v2414_v26, %s1837_s13 }
 0x32d   :  { %1054 = vrot.lane.b32.xlu0 %v2417_v60, %s1837_s13 }
 0x32f   :  { %1056 = vrot.lane.b32.xlu1 %v2422_v33, %s1837_s13 }
 0x331   :  { %1058 = vrot.lane.b32.xlu0 %v2427_v12, %s1837_s13 }
 0x333   :  { %1020 = vrot.lane.b32.xlu1 %v2414_v26, %s1838_s14 }
 0x335   :  { %1022 = vrot.lane.b32.xlu0 %v2417_v60, %s1838_s14 }
 0x337   :  { %1024 = vrot.lane.b32.xlu1 %v2422_v33, %s1838_s14 }
 0x339   :  { %1026 = vrot.lane.b32.xlu0 %v2427_v12, %s1838_s14 }
 0x33b   :  { %988 = vrot.lane.b32.xlu1 %v2414_v26, %s1839_s15 }
 0x33d   :  { %990 = vrot.lane.b32.xlu0 %v2417_v60, %s1839_s15 }
 0x33f   :  { %992 = vrot.lane.b32.xlu1 %v2422_v33, %s1839_s15 }
 0x341   :  { %994 = vrot.lane.b32.xlu0 %v2427_v12, %s1839_s15 }
 0x343   :  { %1004 = vrot.lane.b32.xlu1 %v2414_v26, %s1840_s16 }
 0x345   :  { %1006 = vrot.lane.b32.xlu0 %v2417_v60, %s1840_s16 }
 0x347   :  { %1008 = vrot.lane.b32.xlu1 %v2422_v33, %s1840_s16 }
 0x349   :  { %1010 = vrot.lane.b32.xlu0 %v2427_v12, %s1840_s16 }
 0x34b   :  { %972 = vrot.lane.b32.xlu1 %v2414_v26, %s1843_s17 }
 0x34d   :  { %974 = vrot.lane.b32.xlu0 %v2417_v60, %s1843_s17 }
 0x34f   :  { %976 = vrot.lane.b32.xlu1 %v2422_v33, %s1843_s17 }
 0x351   :  { %978 = vrot.lane.b32.xlu0 %v2427_v12, %s1843_s17 }
 0x353   :  { %1166 = vperm.xlu1 %1761, %v1730_v0  }
 0x385   :  { %v1069_v1 = vpop.permute.xlu1 %1068 }
 0x387   :  { %v1071_v2 = vpop.permute.xlu0 %1070 }
 0x388   :  { %v1078_v61 = vsel %vm308_vm2, %v1069_v1, %v1071_v2 }
 0x389   :  { %v1073_v3 = vpop.permute.xlu1 %1072  ;;  %v1080_v0 = vmul.f32 %v1078_v61, %v2033_v48 }
 0x38a   :  { %v1077_v16 = vsel %vm308_vm2, %v1071_v2, %v1073_v3 }
 0x38b   :  { %v1075_v41 = vpop.permute.xlu0 %1074  ;;  %v1081_v2 = vmul.f32 %v1077_v16, %v2020_v40 }
 0x38c   :  { %v1076_v15 = vsel %vm308_vm2, %v1073_v3, %v1075_v41  ;;  %v1079_v29 = vsel %vm308_vm2, %v1075_v41, %v1069_v1  ;;  %v2839_v1 = vld [vmem:[#allocation11_spill] sm:$0xff] }
 0x38d   :  { %v1085_v20 = vpop.permute.xlu1 %1084  ;;  %v1083_v41 = vmul.f32 %v1079_v29, %v2839_v1 }
 0x38f   :  { %v1087_v7 = vpop.permute.xlu0 %1086 }
 0x390   :  { %v1094_v49 = vsel %vm346_vm0, %v1085_v20, %v1087_v7 }
 0x391   :  { %v1089_v59 = vpop.permute.xlu1 %1088  ;;  %v1096_v4 = vmul.f32 %v1094_v49, %v1994_v24 }
 0x392   :  { %v1093_v62 = vsel %vm346_vm0, %v1087_v7, %v1089_v59  ;;  %v1082_v7 = vmul.f32 %v1076_v15, %v2014_v38  ;;  %v1143_v15 = vrot.slane %v1083_v41, 4 }
 0x393   :  { %v1097_v27 = vmul.f32 %v1093_v62, %v1985_v21  ;;  %v1091_v18 = vpop.permute.xlu0 %1090  ;;  %v2840_v62 = vld [vmem:[#allocation12_spill] sm:$0xff] }
 0x394   :  { %v1092_v58 = vsel %vm346_vm0, %v1089_v59, %v1091_v18  ;;  %v1095_v31 = vsel %vm346_vm0, %v1091_v18, %v1085_v20 }
 0x395   :  { %v1098_v39 = vmul.f32 %v1092_v58, %v1991_v23  ;;  %v1099_v50 = vmul.f32 %v1095_v31, %v1988_v22  ;;  %1731 = vmatprep.subr.msk.mxu0 %vm424_vm1, %v1097_v27  ;;  %v1037_v32 = vpop.permute.xlu1 %1036  ;;  %v1140_v31 = vrot.slane %v1080_v0, 4 }
 0x396   :  { %1732 = vmatpush1.msk.msra.mxu0 %vm424_vm1, %v1096_v4 }
 0x397   :  { %v1039_v47 = vpop.permute.xlu0 %1038  ;;  %1734 = vmatprep.subr.msk.mxu1 %vm424_vm1, %v1099_v50 }
 0x398   :  { %1735 = vmatpush1.msk.msra.mxu1 %vm424_vm1, %v1098_v39  ;;  %v1046_v36 = vsel %vm232_vm3, %v1037_v32, %v1039_v47 }
 0x399   :  { %v1041_v25 = vpop.permute.xlu1 %1040  ;;  %v1048_v27 = vmul.f32 %v1046_v36, %v2840_v62 }
 0x39a   :  { %v1045_v44 = vsel %vm232_vm3, %v1039_v47, %v1041_v25  ;;  %v1141_v47 = vrot.slane %v1081_v2, 4 }
 0x39b   :  { %v1043_v42 = vpop.permute.xlu0 %1042  ;;  %v1049_v3 = vmul.f32 %v1045_v44, %v2041_v51  ;;  %v1128_v44 = vrot.slane %v1048_v27, 4 }
 0x39c   :  { %v1047_v20 = vsel %vm232_vm3, %v1043_v42, %v1037_v32  ;;  %v1044_v49 = vsel %vm232_vm3, %v1041_v25, %v1043_v42  ;;  %v1142_v25 = vrot.slane %v1082_v7, 4 }
 0x39d   :  { %v1053_v28 = vpop.permute.xlu1 %1052  ;;  %v1051_v4 = vmul.f32 %v1047_v20, %v2028_v45  ;;  %v1050_v39 = vmul.f32 %v1044_v49, %v2044_v52  ;;  %v1129_v61 = vrot.slane %v1049_v3, 4 }
 0x39f   :  { %v1055_v59 = vpop.permute.xlu0 %1054  ;;  %v1131_v0 = vrot.slane %v1051_v4, 4  ;;  %v1130_v7 = vrot.slane %v1050_v39, 4  ;;  %v1157_v27 = vsel %vm424_vm1, %v2417_v60, %v1129_v61  ;;  %v1156_v4 = vsel %vm424_vm1, %v2414_v26, %v1128_v44 }
 0x3a0   :  { %v1062_v18 = vsel %vm270_vm4, %v1053_v28, %v1055_v59 }
 0x3a1   :  { %v1057_v58 = vpop.permute.xlu1 %1056  ;;  %v1064_v50 = vmul.f32 %v1062_v18, %v2060_v5  ;;  %v1158_v39 = vsel %vm424_vm1, %v2422_v33, %v1130_v7 }
 0x3a2   :  { %v1061_v32 = vsel %vm270_vm4, %v1055_v59, %v1057_v58 }
 0x3a3   :  { %v1065_v42 = vmul.f32 %v1061_v32, %v2069_v9  ;;  %v1059_v16 = vpop.permute.xlu0 %1058  ;;  %v1160_v3 = vsel %vm424_vm1, %v1064_v50, %v1140_v31  ;;  %v1159_v31 = vsel %vm424_vm1, %v2427_v12, %v1131_v0 }
 0x3a4   :  { %v1060_v29 = vsel %vm270_vm4, %v1057_v58, %v1059_v16  ;;  %v1063_v36 = vsel %vm270_vm4, %v1059_v16, %v1053_v28 }
 0x3a5   :  { %v1066_v20 = vmul.f32 %v1060_v29, %v2072_v10  ;;  %v1067_v49 = vmul.f32 %v1063_v36, %v2063_v6  ;;  %v1021_v59 = vpop.permute.xlu1 %1020  ;;  %v1161_v2 = vsel %vm424_vm1, %v1065_v42, %v1141_v47 }
 0x3a6   :  { %1208 = vmatprep.subr.mxu0 %v1161_v2 }
 0x3a7   :  { %v1023_v41 = vpop.permute.xlu0 %1022  ;;  %1209 = vmatpush1.msra.mxu0 %v1160_v3  ;;  %v1163_v18 = vsel %vm424_vm1, %v1067_v49, %v1143_v15  ;;  %v1162_v28 = vsel %vm424_vm1, %v1066_v20, %v1142_v25 }
 0x3a8   :  { %1210 = vmatprep.subr.mxu0 %v1157_v27  ;;  %1279 = vmatprep.subr.mxu1 %v1163_v18  ;;  %v1030_v61 = vsel %vm194_vm5, %v1021_v59, %v1023_v41 }
 0x3a9   :  { %1211 = vmatpush1.msra.mxu0 %v1156_v4  ;;  %1280 = vmatpush1.msra.mxu1 %v1162_v28  ;;  %v1025_v58 = vpop.permute.xlu1 %1024  ;;  %v1033_v16 = vmul.f32 %v1030_v61, %v2101_v63 }
 0x3aa   :  { %1281 = vmatprep.subr.mxu1 %v1159_v31  ;;  %v1029_v36 = vsel %vm194_vm5, %v1023_v41, %v1025_v58 }
 0x3ab   :  { %v1027_v50 = vpop.permute.xlu0 %1026  ;;  %1282 = vmatpush1.msra.mxu1 %v1158_v39  ;;  %v1117_v2 = vrot.slane %v1033_v16, 4 }
 0x3ac   :  { %v1031_v15 = vsel %vm194_vm5, %v1027_v50, %v1021_v59  ;;  %v1028_v29 = vsel %vm194_vm5, %v1025_v58, %v1027_v50  ;;  %v1034_v59 = vmul.f32 %v1029_v36, %v2111_v17 }
 0x3ad   :  { %v989_v32 = vpop.permute.xlu1 %988  ;;  %v1032_v20 = vmul.f32 %v1031_v15, %v2106_v8  ;;  %v1035_v7 = vmul.f32 %v1028_v29, %v2114_v19 }
 0x3af   :  { %v991_v47 = vpop.permute.xlu0 %990  ;;  %v1116_v58 = vrot.slane %v1032_v20, 4  ;;  %v1119_v61 = vrot.slane %v1035_v7, 4 }
 0x3b0   :  { %v998_v18 = vsel %vm118_vm6, %v989_v32, %v991_v47 }
 0x3b1   :  { %v993_v25 = vpop.permute.xlu1 %992  ;;  %v1001_v16 = vmul.f32 %v998_v18, %v2130_v34 }
 0x3b3   :  { %v995_v42 = vpop.permute.xlu0 %994  ;;  %v1105_v18 = vrot.slane %v1001_v16, 4 }
 0x3b4   :  { %v996_v20 = vsel %vm118_vm6, %v993_v25, %v995_v42 }
 0x3b5   :  { %v1005_v44 = vpop.permute.xlu1 %1004 }
 0x3b7   :  { %v1007_v0 = vpop.permute.xlu0 %1006 }
 0x3b8   :  { %v1014_v49 = vsel %vm156_vm7, %v1005_v44, %v1007_v0 }
 0x3b9   :  { %v1017_v3 = vmul.f32 %v1014_v49, %v2124_v30  ;;  %v1009_v27 = vpop.permute.xlu1 %1008  ;;  %v999_v49 = vsel %vm118_vm6, %v995_v42, %v989_v32  ;;  %v1003_v32 = vmul.f32 %v996_v20, %v2153_v56  ;;  %v969_v20 = vld [vmem:[#allocation2 + $0x4] sm:$0xf] }
 0x3ba   :  { %v1013_v41 = vsel %vm156_vm7, %v1007_v0, %v1009_v27  ;;  %v1118_v0 = vrot.slane %v1034_v59, 4 }
 0x3bb   :  { %v1011_v28 = vpop.permute.xlu0 %1010  ;;  %v1153_v4 = vsel %vm424_vm1, %v1017_v3, %v1117_v2  ;;  %v1018_v31 = vmul.f32 %v1013_v41, %v2147_v53  ;;  %v997_v2 = vsel %vm118_vm6, %v991_v47, %v993_v25  ;;  %v1000_v41 = vmul.f32 %v999_v49, %v2133_v35 }
 0x3bc   :  { %v1012_v39 = vsel %vm156_vm7, %v1009_v27, %v1011_v28  ;;  %v1015_v50 = vsel %vm156_vm7, %v1011_v28, %v1005_v44  ;;  %1212 = vmatprep.subr.mxu0 %v1153_v4  ;;  %v1002_v25 = vmul.f32 %v997_v2, %v2138_v43  ;;  %v1107_v16 = vrot.slane %v1003_v32, 4 }
 0x3bd   :  { %v1016_v15 = vmul.f32 %v1015_v50, %v2143_v46  ;;  %v1019_v29 = vmul.f32 %v1012_v39, %v2150_v54  ;;  %v973_v36 = vpop.permute.xlu1 %972  ;;  %v1154_v59 = vsel %vm424_vm1, %v1018_v31, %v1118_v0 }
 0x3be   :  { %v1106_v0 = vrot.slane %v1002_v25, 4 }
 0x3bf   :  { %v975_v44 = vpop.permute.xlu0 %974  ;;  %v1152_v7 = vsel %vm424_vm1, %v1016_v15, %v1116_v58  ;;  %v1155_v3 = vsel %vm424_vm1, %v1019_v29, %v1119_v61  ;;  %v1104_v61 = vrot.slane %v1000_v41, 4 }
 0x3c0   :  { %v982_v27 = vsel %vm80_vm8, %v973_v36, %v975_v44  ;;  %1213 = vmatpush1.msra.mxu0 %v1152_v7  ;;  %1283 = vmatprep.subr.mxu1 %v1155_v3 }
 0x3c1   :  { %v985_v42 = vmul.f32 %v982_v27, %v2157_v57  ;;  %1284 = vmatpush1.msra.mxu1 %v1154_v59  ;;  %v977_v47 = vpop.permute.xlu1 %976 }
 0x3c2   :  { %v981_v28 = vsel %vm80_vm8, %v975_v44, %v977_v47 }
 0x3c3   :  { %v979_v4 = vpop.permute.xlu0 %978  ;;  %v1149_v58 = vsel %vm424_vm1, %v985_v42, %v1105_v18  ;;  %v986_v39 = vmul.f32 %v981_v28, %v2187_v14 }
 0x3c4   :  { %v980_v31 = vsel %vm80_vm8, %v977_v47, %v979_v4  ;;  %v983_v50 = vsel %vm80_vm8, %v979_v4, %v973_v36  ;;  %1214 = vmatprep.subr.mxu0 %v1149_v58  ;;  %v1738_v4 = vld [vmem:[%s2827_s4 + $0x4] sm:$0xf] }
 0x3c5   :  { %v984_v15 = vmul.f32 %v983_v50, %v2177_v37  ;;  %v987_v29 = vmul.f32 %v980_v31, %v2192_v55  ;;  %v1150_v44 = vsel %vm424_vm1, %v986_v39, %v1106_v0 }
 0x3c7   :  { %v1148_v49 = vsel %vm424_vm1, %v984_v15, %v1104_v61  ;;  %v1151_v2 = vsel %vm424_vm1, %v987_v29, %v1107_v16 }
 0x3c8   :  { %1215 = vmatpush1.msra.mxu0 %v1148_v49  ;;  %1285 = vmatprep.subr.mxu1 %v1151_v2 }
 0x3c9   :  { %1733 = vmatmul.mubr.msk.f32.vlgmr.msra.gmra.mxu0 %vm446_vm9, %v969_v20  ;;  %1286 = vmatpush1.msra.mxu1 %v1150_v44 }
 0x3ca   :  { %1736 = vmatmul.mubr.msk.f32.vlgmr.msra.gmra.mxu1 %vm446_vm9, %v969_v20  ;;  %1610 = vmatprep.mubr.f32.mxu0 %v2838_v11 }
 0x3cb   :  { %1681 = vmatprep.mubr.f32.mxu1 %v2838_v11 }
 0x3ce   :  { %v1167_v36 = vpop.permute.xlu1 %1166 }
 0x489   :  { %v1250_v7 = vpop.f32.mrf.mxu0 }
 0x48a   :  { %v1251_v3 = vadd.f32 %v1250_v7, %v1167_v36  ;;  %v1321_v27 = vpop.f32.mrf.mxu1 }
 0x48b   :  { %v1252_v59 = vpop.f32.mrf.mxu0  ;;  %v1322_v41 = vadd.f32 %v1321_v27, %v1167_v36 }
 0x48c   :  { %v2616_v18 = vmax.f32 %v1251_v3, 0.0  ;;  %v1253_v32 = vadd.f32 %v1252_v59, %v1167_v36  ;;  %v1323_v42 = vpop.f32.mrf.mxu1 }
 0x48d   :  { %v1324_v25 = vadd.f32 %v1323_v42, %v1167_v36  ;;  %v2622_v28 = vmax.f32 %v1322_v41, 0.0 }
 0x48e   :  { %v2618_v47 = vmax.f32 %v1253_v32, 0.0  ;;  %1430 = vrot.lane.b32.xlu0 %v2616_v18, %s1834_s12 }
 0x48f   :  { %v2626_v11 = vmax.f32 %v1324_v25, 0.0 }
 0x490   :  { %1432 = vrot.lane.b32.xlu1 %v2618_v47, %s1834_s12 }
 0x492   :  { %1434 = vrot.lane.b32.xlu0 %v2622_v28, %s1834_s12 }
 0x494   :  { %1436 = vrot.lane.b32.xlu1 %v2626_v11, %s1834_s12 }
 0x496   :  { %1446 = vrot.lane.b32.xlu0 %v2616_v18, %s1835_s5 }
 0x498   :  { %1448 = vrot.lane.b32.xlu1 %v2618_v47, %s1835_s5 }
 0x49a   :  { %1450 = vrot.lane.b32.xlu0 %v2622_v28, %s1835_s5 }
 0x49c   :  { %1452 = vrot.lane.b32.xlu1 %v2626_v11, %s1835_s5 }
 0x49e   :  { %1398 = vrot.lane.b32.xlu0 %v2616_v18, %s1836_s0 }
 0x4a0   :  { %1400 = vrot.lane.b32.xlu1 %v2618_v47, %s1836_s0 }
 0x4a2   :  { %1402 = vrot.lane.b32.xlu0 %v2622_v28, %s1836_s0 }
 0x4a4   :  { %1404 = vrot.lane.b32.xlu1 %v2626_v11, %s1836_s0 }
 0x4a6   :  { %1414 = vrot.lane.b32.xlu0 %v2616_v18, %s1837_s13 }
 0x4a8   :  { %1416 = vrot.lane.b32.xlu1 %v2618_v47, %s1837_s13 }
 0x4aa   :  { %1418 = vrot.lane.b32.xlu0 %v2622_v28, %s1837_s13 }
 0x4ac   :  { %1420 = vrot.lane.b32.xlu1 %v2626_v11, %s1837_s13 }
 0x4ae   :  { %1382 = vrot.lane.b32.xlu0 %v2616_v18, %s1838_s14 }
 0x4b0   :  { %1384 = vrot.lane.b32.xlu1 %v2618_v47, %s1838_s14 }
 0x4b2   :  { %1386 = vrot.lane.b32.xlu0 %v2622_v28, %s1838_s14 }
 0x4b4   :  { %1388 = vrot.lane.b32.xlu1 %v2626_v11, %s1838_s14 }
 0x4b6   :  { %1350 = vrot.lane.b32.xlu0 %v2616_v18, %s1839_s15 }
 0x4b8   :  { %1352 = vrot.lane.b32.xlu1 %v2618_v47, %s1839_s15 }
 0x4ba   :  { %1354 = vrot.lane.b32.xlu0 %v2622_v28, %s1839_s15 }
 0x4bc   :  { %1356 = vrot.lane.b32.xlu1 %v2626_v11, %s1839_s15 }
 0x4be   :  { %1366 = vrot.lane.b32.xlu0 %v2616_v18, %s1840_s16 }
 0x4c0   :  { %1368 = vrot.lane.b32.xlu1 %v2618_v47, %s1840_s16 }
 0x4c2   :  { %1370 = vrot.lane.b32.xlu0 %v2622_v28, %s1840_s16 }
 0x4c4   :  { %1372 = vrot.lane.b32.xlu1 %v2626_v11, %s1840_s16 }
 0x4c6   :  { %1334 = vrot.lane.b32.xlu0 %v2616_v18, %s1843_s17 }
 0x4c8   :  { %1336 = vrot.lane.b32.xlu1 %v2618_v47, %s1843_s17 }
 0x4ca   :  { %1338 = vrot.lane.b32.xlu0 %v2622_v28, %s1843_s17 }
 0x4cc   :  { %1340 = vrot.lane.b32.xlu1 %v2626_v11, %s1843_s17 }
 0x4ce   :  { %1528 = vperm.xlu0 %1760, %v1738_v4  }
 0x500   :  { %v1431_v58 = vpop.permute.xlu0 %1430 }
 0x502   :  { %v1433_v39 = vpop.permute.xlu1 %1432 }
 0x504   :  { %v1435_v31 = vpop.permute.xlu0 %1434 }
 0x506   :  { %v1437_v50 = vpop.permute.xlu1 %1436 }
 0x507   :  { %v1441_v42 = vsel %vm308_vm2, %v1437_v50, %v1431_v58 }
 0x508   :  { %v1447_v61 = vpop.permute.xlu0 %1446 }
 0x50a   :  { %v1449_v16 = vpop.permute.xlu1 %1448 }
 0x50b   :  { %v1456_v15 = vsel %vm346_vm0, %v1447_v61, %v1449_v16 }
 0x50c   :  { %v1451_v29 = vpop.permute.xlu0 %1450  ;;  %v1458_v2 = vmul.f32 %v1456_v15, %v1994_v24  ;;  %v1440_v24 = vsel %vm308_vm2, %v1431_v58, %v1433_v39  ;;  %v1445_v58 = vmul.f32 %v1441_v42, %v2839_v1 }
 0x50d   :  { %v1455_v0 = vsel %vm346_vm0, %v1449_v16, %v1451_v29 }
 0x50e   :  { %v1459_v20 = vmul.f32 %v1455_v0, %v1985_v21  ;;  %v1453_v49 = vpop.permute.xlu1 %1452 }
 0x50f   :  { %v1454_v44 = vsel %vm346_vm0, %v1451_v29, %v1453_v49  ;;  %v1457_v36 = vsel %vm346_vm0, %v1453_v49, %v1447_v61  ;;  %v1442_v61 = vmul.f32 %v1440_v24, %v2033_v48 }
 0x510   :  { %v1460_v7 = vmul.f32 %v1454_v44, %v1991_v23  ;;  %v1461_v3 = vmul.f32 %v1457_v36, %v1988_v22  ;;  %1739 = vmatprep.subr.msk.mxu0 %vm424_vm1, %v1459_v20  ;;  %v1399_v27 = vpop.permute.xlu0 %1398  ;;  %v1439_v23 = vsel %vm308_vm2, %v1433_v39, %v1435_v31  ;;  %v1438_v22 = vsel %vm308_vm2, %v1435_v31, %v1437_v50 }
 0x511   :  { %1740 = vmatpush1.msk.msra.mxu0 %vm424_vm1, %v1458_v2  ;;  %v1443_v39 = vmul.f32 %v1439_v23, %v2020_v40  ;;  %v1444_v15 = vmul.f32 %v1438_v22, %v2014_v38  ;;  %v1502_v2 = vrot.slane %v1442_v61, 4 }
 0x512   :  { %v1401_v59 = vpop.permute.xlu1 %1400  ;;  %1742 = vmatprep.subr.msk.mxu1 %vm424_vm1, %v1461_v3  ;;  %v1505_v3 = vrot.slane %v1445_v58, 4 }
 0x513   :  { %1743 = vmatpush1.msk.msra.mxu1 %vm424_vm1, %v1460_v7  ;;  %v1408_v25 = vsel %vm232_vm3, %v1399_v27, %v1401_v59  ;;  %v1503_v44 = vrot.slane %v1443_v39, 4  ;;  %v1504_v36 = vrot.slane %v1444_v15, 4 }
 0x514   :  { %v1403_v21 = vpop.permute.xlu0 %1402  ;;  %v1410_v50 = vmul.f32 %v1408_v25, %v2840_v62 }
 0x515   :  { %v1407_v32 = vsel %vm232_vm3, %v1401_v59, %v1403_v21 }
 0x516   :  { %v1405_v41 = vpop.permute.xlu1 %1404  ;;  %v1411_v31 = vmul.f32 %v1407_v32, %v2041_v51 }
 0x517   :  { %v1409_v16 = vsel %vm232_vm3, %v1405_v41, %v1399_v27  ;;  %v1406_v29 = vsel %vm232_vm3, %v1403_v21, %v1405_v41  ;;  %v1490_v27 = vrot.slane %v1410_v50, 4 }
 0x518   :  { %v1415_v4 = vpop.permute.xlu0 %1414  ;;  %v1413_v20 = vmul.f32 %v1409_v16, %v2028_v45  ;;  %v1412_v40 = vmul.f32 %v1406_v29, %v2044_v52  ;;  %v1491_v7 = vrot.slane %v1411_v31, 4 }
 0x51a   :  { %v1417_v0 = vpop.permute.xlu1 %1416  ;;  %v1493_v52 = vrot.slane %v1413_v20, 4  ;;  %v1492_v23 = vrot.slane %v1412_v40, 4  ;;  %v1519_v32 = vsel %vm424_vm1, %v2618_v47, %v1491_v7 }
 0x51b   :  { %v1424_v48 = vsel %vm270_vm4, %v1415_v4, %v1417_v0 }
 0x51c   :  { %v1419_v49 = vpop.permute.xlu0 %1418  ;;  %v1426_v38 = vmul.f32 %v1424_v48, %v2060_v5  ;;  %v1520_v61 = vsel %vm424_vm1, %v2622_v28, %v1492_v23 }
 0x51d   :  { %v1423_v51 = vsel %vm270_vm4, %v1417_v0, %v1419_v49 }
 0x51e   :  { %v1427_v1 = vmul.f32 %v1423_v51, %v2069_v9  ;;  %v1421_v62 = vpop.permute.xlu1 %1420  ;;  %v1522_v9 = vsel %vm424_vm1, %v1426_v38, %v1502_v2 }
 0x51f   :  { %v1422_v45 = vsel %vm270_vm4, %v1419_v49, %v1421_v62  ;;  %v1425_v59 = vsel %vm270_vm4, %v1421_v62, %v1415_v4  ;;  %v1521_v4 = vsel %vm424_vm1, %v2626_v11, %v1493_v52 }
 0x520   :  { %v1428_v5 = vmul.f32 %v1422_v45, %v2072_v10  ;;  %v1429_v21 = vmul.f32 %v1425_v59, %v2063_v6  ;;  %v1383_v24 = vpop.permute.xlu0 %1382  ;;  %v1523_v41 = vsel %vm424_vm1, %v1427_v1, %v1503_v44  ;;  %v1518_v6 = vsel %vm424_vm1, %v2616_v18, %v1490_v27 }
 0x521   :  { %1570 = vmatprep.subr.mxu0 %v1523_v41 }
 0x522   :  { %v1385_v22 = vpop.permute.xlu1 %1384  ;;  %1571 = vmatpush1.msra.mxu0 %v1522_v9  ;;  %v1525_v42 = vsel %vm424_vm1, %v1429_v21, %v1505_v3  ;;  %v1524_v25 = vsel %vm424_vm1, %v1428_v5, %v1504_v36 }
 0x523   :  { %1572 = vmatprep.subr.mxu0 %v1519_v32  ;;  %1641 = vmatprep.subr.mxu1 %v1525_v42  ;;  %v1392_v31 = vsel %vm194_vm5, %v1383_v24, %v1385_v22 }
 0x524   :  { %1573 = vmatpush1.msra.mxu0 %v1518_v6  ;;  %1642 = vmatpush1.msra.mxu1 %v1524_v25  ;;  %v1387_v10 = vpop.permute.xlu0 %1386  ;;  %v1395_v18 = vmul.f32 %v1392_v31, %v2101_v63 }
 0x525   :  { %1643 = vmatprep.subr.mxu1 %v1521_v4  ;;  %v1391_v28 = vsel %vm194_vm5, %v1385_v22, %v1387_v10 }
 0x526   :  { %v1389_v47 = vpop.permute.xlu1 %1388  ;;  %1644 = vmatpush1.msra.mxu1 %v1520_v61  ;;  %v1479_v49 = vrot.slane %v1395_v18, 4  ;;  %v1396_v38 = vmul.f32 %v1391_v28, %v2111_v17 }
 0x527   :  { %v1393_v0 = vsel %vm194_vm5, %v1389_v47, %v1383_v24  ;;  %v1390_v11 = vsel %vm194_vm5, %v1387_v10, %v1389_v47 }
 0x528   :  { %v1351_v16 = vpop.permute.xlu0 %1350  ;;  %v1394_v48 = vmul.f32 %v1393_v0, %v2106_v8  ;;  %v1397_v2 = vmul.f32 %v1390_v11, %v2114_v19  ;;  %v1480_v59 = vrot.slane %v1396_v38, 4 }
 0x52a   :  { %v1353_v39 = vpop.permute.xlu1 %1352  ;;  %v1478_v7 = vrot.slane %v1394_v48, 4  ;;  %v1481_v17 = vrot.slane %v1397_v2, 4 }
 0x52b   :  { %v1360_v51 = vsel %vm118_vm6, %v1351_v16, %v1353_v39 }
 0x52c   :  { %v1355_v15 = vpop.permute.xlu0 %1354  ;;  %v1363_v62 = vmul.f32 %v1360_v51, %v2130_v34 }
 0x52d   :  { %v1359_v5 = vsel %vm118_vm6, %v1353_v39, %v1355_v15  ;;  %v1737_v39 = vld [vmem:[%s2826_s3 + $0x4] sm:$0xf]  ;;  %s1844_s3 = smov [#allocation7]  }
 0x52e   :  { %v1357_v29 = vpop.permute.xlu1 %1356  ;;  %v1467_v41 = vrot.slane %v1363_v62, 4  ;;  %v1364_v42 = vmul.f32 %v1359_v5, %v2138_v43  ;;  %s1708_s28 = sshll.u32 %s1844_s3, 4  ;;  %s1709_s28 = int_to_ptr.vmem [resolvable:$true] %s1708_s28 }
 0x52f   :  { %v1358_v52 = vsel %vm118_vm6, %v1355_v15, %v1357_v29  ;;  %s1804_s29 = scalar_lea.vmem %s1709_s28, 256  ;;  %p1809_p11 = scmp.lt.s32.totalorder %s1709_s28, %s1709_s28 }
 0x530   :  { %v1367_v58 = vpop.permute.xlu0 %1366  ;;  %v1365_v9 = vmul.f32 %v1358_v52, %v2153_v56  ;;  %p1805_p10 = scmp.ne.s32.totalorder %s1709_s28, %s1804_s29  ;;  %p1810_p12 = scmp.lt.s32.totalorder %s1804_s29, %s1804_s29 }
 0x532   :  { %v1369_v50 = vpop.permute.xlu1 %1368  ;;  %p1811_p13 = por %p1810_p12, %p1809_p11 }
 0x533   :  { %v1376_v20 = vsel %vm156_vm7, %v1367_v58, %v1369_v50 }
 0x534   :  { %v1379_v63 = vmul.f32 %v1376_v20, %v2124_v30  ;;  %v1371_v40 = vpop.permute.xlu0 %1370  ;;  %p1812_p0 = pnand %p1811_p13, %p1805_p10 }
 0x535   :  { %v1375_v44 = vsel %vm156_vm7, %v1369_v50, %v1371_v40 }
 0x536   :  { %v1373_v36 = vpop.permute.xlu1 %1372  ;;  %v1515_v8 = vsel %vm424_vm1, %v1379_v63, %v1479_v49  ;;  %v1380_v1 = vmul.f32 %v1375_v44, %v2147_v53  ;;  %v1361_v53 = vsel %vm118_vm6, %v1357_v29, %v1351_v16  ;;  %v1468_v16 = vrot.slane %v1364_v42, 4 }
 0x537   :  { %v1374_v19 = vsel %vm156_vm7, %v1371_v40, %v1373_v36  ;;  %v1377_v30 = vsel %vm156_vm7, %v1373_v36, %v1367_v58  ;;  %1574 = vmatprep.subr.mxu0 %v1515_v8  ;;  %v1362_v23 = vmul.f32 %v1361_v53, %v2133_v35 }
 0x538   :  { %v1378_v3 = vmul.f32 %v1377_v30, %v2143_v46  ;;  %v1381_v27 = vmul.f32 %v1374_v19, %v2150_v54  ;;  %v1335_v45 = vpop.permute.xlu0 %1334  ;;  %v1516_v54 = vsel %vm424_vm1, %v1380_v1, %v1480_v59 }
 0x539   :  { %v1466_v56 = vrot.slane %v1362_v23, 4 }
 0x53a   :  { %v1337_v21 = vpop.permute.xlu1 %1336  ;;  %v1514_v24 = vsel %vm424_vm1, %v1378_v3, %v1478_v7  ;;  %v1517_v34 = vsel %vm424_vm1, %v1381_v27, %v1481_v17 }
 0x53b   :  { %v1344_v46 = vsel %vm80_vm8, %v1335_v45, %v1337_v21  ;;  %1575 = vmatpush1.msra.mxu0 %v1514_v24  ;;  %1645 = vmatprep.subr.mxu1 %v1517_v34 }
 0x53c   :  { %v1347_v22 = vmul.f32 %v1344_v46, %v2157_v57  ;;  %1646 = vmatpush1.msra.mxu1 %v1516_v54  ;;  %v1339_v32 = vpop.permute.xlu0 %1338  ;;  %v1469_v57 = vrot.slane %v1365_v9, 4 }
 0x53d   :  { %v1343_v25 = vsel %vm80_vm8, %v1337_v21, %v1339_v32 }
 0x53e   :  { %v1341_v6 = vpop.permute.xlu1 %1340  ;;  %v1511_v10 = vsel %vm424_vm1, %v1347_v22, %v1467_v41  ;;  %v1348_v4 = vmul.f32 %v1343_v25, %v2187_v14 }
 0x53f   :  { %v1342_v61 = vsel %vm80_vm8, %v1339_v32, %v1341_v6  ;;  %v1345_v35 = vsel %vm80_vm8, %v1341_v6, %v1335_v45  ;;  %1576 = vmatprep.subr.mxu0 %v1511_v10 }
 0x540   :  { %v1346_v47 = vmul.f32 %v1345_v35, %v2177_v37  ;;  %v1349_v43 = vmul.f32 %v1342_v61, %v2192_v55  ;;  %v1512_v13 = vsel %vm424_vm1, %v1348_v4, %v1468_v16 }
 0x542   :  { %v1510_v14 = vsel %vm424_vm1, %v1346_v47, %v1466_v56  ;;  %v1513_v15 = vsel %vm424_vm1, %v1349_v43, %v1469_v57 }
 0x543   :  { %1577 = vmatpush1.msra.mxu0 %v1510_v14  ;;  %1647 = vmatprep.subr.mxu1 %v1513_v15 }
 0x544   :  { %1741 = vmatmul.mubr.msk.f32.vlgmr.msra.gmra.mxu0 %vm446_vm9, %v1737_v39  ;;  %1648 = vmatpush1.msra.mxu1 %v1512_v13 }
 0x545   :  { %1744 = vmatmul.mubr.msk.f32.vlgmr.msra.gmra.mxu1 %vm446_vm9, %v1737_v39 }
 0x549   :  { %v1529_v37 = vpop.permute.xlu0 %1528 }
 0x604   :  { %v1612_v55 = vpop.f32.mrf.mxu0 }
 0x605   :  { %v1613_v31 = vadd.f32 %v1612_v55, %v1529_v37  ;;  %v1683_v29 = vpop.f32.mrf.mxu1 }
 0x606   :  { %v1684_v18 = vadd.f32 %v1683_v29, %v1529_v37  ;;  %v1614_v0 = vpop.f32.mrf.mxu0 }
 0x607   :  { %v1615_v58 = vadd.f32 %v1614_v0, %v1529_v37  ;;  %v1685_v11 = vpop.f32.mrf.mxu1  ;;  %v1688_v50 = vadd.f32 %v1613_v31, %v2414_v26 }
 0x608   :  { %v1686_v28 = vadd.f32 %v1685_v11, %v1529_v37  ;;  %v1690_v20 = vadd.f32 %v1684_v18, %v2422_v33 }
 0x609   :  { %v1689_v48 = vadd.f32 %v1615_v58, %v2417_v60 }
 0x60a   :  { %v1691_v49 = vadd.f32 %v1686_v28, %v2427_v12 }
 0x60b   :  { %v1696_v2 = vcombine.low %v1688_v50, %v1689_v48 }
 0x60c   :  { %v1697_v63 = vcombine.low %v1690_v20, %v1691_v49 }
 0x60d   :  { %1700 = vst [vmem:[#allocation7] sm:$0xff] %v1696_v2 }
 0x60e   :  { %1701 = vst [vmem:[#allocation7 + $0x8] sm:$0xff] %v1697_v63 }
 0x60f   :  { %1815 = shalt.err (!%p1812_p0)
}
 0x610   :  { %1711 = dma.vmem_to_hbm [thread:$0]  %s1709_s28, 256, %s2829_s6, [#allocation4]  }
 0x611   :  { %1828 = dma.done.wait [#allocation4], 256  }
 0x612   :  { %1829 = vsyncadd [#allocation4], 4294967040 }
 0x613   :  { %1715 = vsyncpa [#allocation3], 1 }
 0x614   :  { %1716 = vsyncpa [#allocation6], 1 }
 0x615   :  { %1717 = vsyncpa [#allocation4], 1 }

</bundles_post_ra>
